<compile_context>
chip_gen: v6e
topology: v6e:2x2x1
jax: 0.10.0
libtpu: 0.0.40
codegen_flags: <defaults>
</compile_context>

<pallas_src>
from functools import partial

import numpy as np
import jax
import jax.numpy as jnp
from jax.experimental import pallas as pl
from jax.experimental.pallas import tpu as pltpu

EPS = 1e-5                      # torch nn.LayerNorm default eps
VMEM_LIMIT_BYTES = 48 * 1024 * 1024

# Order of the stacked per-layer weight arrays (must match kernel signature).
WEIGHT_ORDER = ('ln1_g', 'ln1_b',
                'wq', 'bq', 'wk', 'bk', 'wv', 'bv',
                'wproj', 'bproj',
                'ln2_g', 'ln2_b',
                'w1', 'b1', 'w2', 'b2')


def _layernorm(x, g, b):
    # f32 statistics, biased variance (matches torch LayerNorm).
    mu = jnp.mean(x, axis=-1, keepdims=True)
    var = jnp.mean(jnp.square(x - mu), axis=-1, keepdims=True)
    return (x - mu) * jax.lax.rsqrt(var + EPS) * g + b


def _gelu_exact(x):
    # torch nn.GELU() default = exact erf formulation, kept in f32.
    return 0.5 * x * (1.0 + jax.lax.erf(x * 0.7071067811865476))


# ----------------------------- fused encoder kernel -----------------------------
def encoder_kernel(num_heads,
                   x_ref,
                   ln1_g_ref, ln1_b_ref,
                   wq_ref, bq_ref, wk_ref, bk_ref, wv_ref, bv_ref,
                   wproj_ref, bproj_ref,
                   ln2_g_ref, ln2_b_ref,
                   w1_ref, b1_ref, w2_ref, b2_ref,
                   out_ref):
    layer = pl.program_id(1)

    # Residual stream carry: initialize from x at the first layer; out block is
    # resident across the layer axis (same block index), written back once per batch.
    @pl.when(layer == 0)
    def _():
        out_ref[...] = x_ref[...]

    x = out_ref[0]                                  # (N, E) f32 residual stream
    N, E = x.shape
    H = num_heads
    D = E // H
    inv_scale = 1.0 / (E ** 0.5)                    # reference: softmax(energy) / sqrt(emb)

    # ---------------- attention sublayer ----------------
    h = _layernorm(x, ln1_g_ref[0], ln1_b_ref[0])   # f32
    hb = h.astype(jnp.bfloat16)                     # bf16 MXU feed

    q = jnp.dot(hb, wq_ref[0], preferred_element_type=jnp.float32) + bq_ref[0]
    k = jnp.dot(hb, wk_ref[0], preferred_element_type=jnp.float32) + bk_ref[0]
    v = jnp.dot(hb, wv_ref[0], preferred_element_type=jnp.float32) + bv_ref[0]

    # (N, E) -> (H, N, D): heads batched on a leading axis so the attention einsums
    # are single batched MXU ops instead of H tiny ones.
    qh = jnp.stack([q[:, hh * D:(hh + 1) * D] for hh in range(H)], axis=0).astype(jnp.bfloat16)
    kh = jnp.stack([k[:, hh * D:(hh + 1) * D] for hh in range(H)], axis=0).astype(jnp.bfloat16)
    vh = jnp.stack([v[:, hh * D:(hh + 1) * D] for hh in range(H)], axis=0).astype(jnp.bfloat16)

    energy = jnp.einsum('hqd,hkd->hqk', qh, kh,
                        preferred_element_type=jnp.float32)          # (H, N, N) f32
    m = jnp.max(energy, axis=-1, keepdims=True)                      # f32 softmax stats
    p = jnp.exp(energy - m)
    s = jnp.sum(p, axis=-1, keepdims=True)
    # Reference applies softmax first, THEN divides by sqrt(emb_size).
    att = p * (pl.reciprocal(s, approx=True) * inv_scale)

    ctx = jnp.einsum('hqk,hkd->hqd', att.astype(jnp.bfloat16), vh,
                     preferred_element_type=jnp.float32)             # (H, N, D) f32
    attn = jnp.concatenate([ctx[hh] for hh in range(H)], axis=-1)    # 'b h n d -> b n (h d)'

    proj = jnp.dot(attn.astype(jnp.bfloat16), wproj_ref[0],
                   preferred_element_type=jnp.float32) + bproj_ref[0]
    x = x + proj                                                     # residual add

    # ---------------- feed-forward sublayer ----------------
    h = _layernorm(x, ln2_g_ref[0], ln2_b_ref[0])
    f = jnp.dot(h.astype(jnp.bfloat16), w1_ref[0],
                preferred_element_type=jnp.float32) + b1_ref[0]
    f = _gelu_exact(f)                                               # f32 GELU
    f = jnp.dot(f.astype(jnp.bfloat16), w2_ref[0],
                preferred_element_type=jnp.float32) + b2_ref[0]
    x = x + f                                                        # residual add

    out_ref[0] = x


# ----------------------------- classification head kernel -----------------------------
def head_kernel(x_ref, ln_g_ref, ln_b_ref, w_ref, b_ref, out_ref):
    x = x_ref[0]                                     # (N, E) f32
    pooled = jnp.mean(x, axis=0, keepdims=True)      # Reduce 'b n e -> b e', mean
    h = _layernorm(pooled, ln_g_ref[...], ln_b_ref[...])
    out_ref[0] = jnp.dot(h.astype(jnp.bfloat16), w_ref[...],
                         preferred_element_type=jnp.float32) + b_ref[...]


# ----------------------------- model forward -----------------------------
def server_model_vit(x, params, num_heads):
    B, N, E = x.shape
    blocks = params['blocks']
    depth = blocks['ln1_g'].shape[0]

    # Encoder: single pallas_call, grid = (batch, layer).
    in_specs = [pl.BlockSpec((1, N, E), lambda b, l: (b, 0, 0))]
    args = [x]
    for name in WEIGHT_ORDER:
        arr = blocks[name]
        in_specs.append(pl.BlockSpec((1,) + arr.shape[1:], lambda b, l: (l, 0, 0)))
        args.append(arr)

    x = pl.pallas_call(
        partial(encoder_kernel, num_heads),
        out_shape=jax.ShapeDtypeStruct((B, N, E), jnp.float32),
        grid=(B, depth),
        in_specs=in_specs,
        out_specs=pl.BlockSpec((1, N, E), lambda b, l: (b, 0, 0)),
        input_output_aliases={0: 0},                 # residual stream written in place over x
        compiler_params=pltpu.CompilerParams(
            dimension_semantics=("parallel", "arbitrary"),
            vmem_limit_bytes=VMEM_LIMIT_BYTES),
    )(*args)

    # Classification head: grid over batch.
    head = params['head']
    C = head['w'].shape[-1]
    logits = pl.pallas_call(
        head_kernel,
        out_shape=jax.ShapeDtypeStruct((B, 1, C), jnp.float32),
        grid=(B,),
        in_specs=[pl.BlockSpec((1, N, E), lambda b: (b, 0, 0)),
                  pl.BlockSpec((1, E), lambda b: (0, 0)),
                  pl.BlockSpec((1, E), lambda b: (0, 0)),
                  pl.BlockSpec((E, C), lambda b: (0, 0)),
                  pl.BlockSpec((1, C), lambda b: (0, 0))],
        out_specs=pl.BlockSpec((1, 1, C), lambda b: (b, 0, 0)),
        compiler_params=pltpu.CompilerParams(
            dimension_semantics=("parallel",),
            vmem_limit_bytes=VMEM_LIMIT_BYTES),
    )(x, head['ln_g'], head['ln_b'], head['w'], head['b'])
    return logits.reshape(B, C)


# ----------------------------- parameters -----------------------------
def _linear(key, fan_in, fan_out):
    # torch nn.Linear default init: U(-1/sqrt(fan_in), 1/sqrt(fan_in)) for W and b.
    kw, kb = jax.random.split(key)
    bound = 1.0 / np.sqrt(fan_in)
    w = jax.random.uniform(kw, (fan_in, fan_out), jnp.float32, -bound, bound)
    b = jax.random.uniform(kb, (1, fan_out), jnp.float32, -bound, bound)
    return w, b


def _qkv_perm(E, H):
    # torch ref splits the qkv output as '(h d qkv)' (qkv innermost).  Permute the
    # fused weight columns so that new column (c*E + h*D + d) == old (h*D*3 + d*3 + c),
    # i.e. we get contiguous head-major [ q | k | v ] slabs (semantics-preserving).
    D = E // H
    perm = np.empty(3 * E, dtype=np.int32)
    for c in range(3):
        for h in range(H):
            for d in range(D):
                perm[c * E + h * D + d] = h * D * 3 + d * 3 + c
    return perm


def make_params(key, emb, depth, num_heads, n_classes, expansion=4):
    assert emb % num_heads == 0
    E, F = emb, expansion * emb
    perm = _qkv_perm(E, num_heads)
    acc = {name: [] for name in WEIGHT_ORDER}
    for _ in range(depth):
        key, k1, k2, k3, k4 = jax.random.split(key, 5)
        acc['ln1_g'].append(jnp.ones((1, E), jnp.float32))
        acc['ln1_b'].append(jnp.zeros((1, E), jnp.float32))
        wqkv, bqkv = _linear(k1, E, 3 * E)
        wqkv = wqkv[:, perm]
        bqkv = bqkv[:, perm]
        acc['wq'].append(wqkv[:, 0 * E:1 * E]); acc['bq'].append(bqkv[:, 0 * E:1 * E])
        acc['wk'].append(wqkv[:, 1 * E:2 * E]); acc['bk'].append(bqkv[:, 1 * E:2 * E])
        acc['wv'].append(wqkv[:, 2 * E:3 * E]); acc['bv'].append(bqkv[:, 2 * E:3 * E])
        wp, bp = _linear(k2, E, E)
        acc['wproj'].append(wp); acc['bproj'].append(bp)
        acc['ln2_g'].append(jnp.ones((1, E), jnp.float32))
        acc['ln2_b'].append(jnp.zeros((1, E), jnp.float32))
        w1, b1 = _linear(k3, E, F)
        acc['w1'].append(w1); acc['b1'].append(b1)
        w2, b2 = _linear(k4, F, E)
        acc['w2'].append(w2); acc['b2'].append(b2)

    matmul_weights = {'wq', 'wk', 'wv', 'wproj', 'w1', 'w2'}
    blocks = {}
    for name in WEIGHT_ORDER:
        arr = jnp.stack(acc[name], axis=0)           # leading depth axis
        if name in matmul_weights:
            arr = arr.astype(jnp.bfloat16)           # bf16 MXU weights; biases/LN stay f32
        blocks[name] = arr

    key, kh = jax.random.split(key)
    wh, bh = _linear(kh, E, n_classes)
    head = {'ln_g': jnp.ones((1, E), jnp.float32),
            'ln_b': jnp.zeros((1, E), jnp.float32),
            'w': wh.astype(jnp.bfloat16),
            'b': bh}
    return {'blocks': blocks, 'head': head}


if __name__ == "__main__":
    B, N, E = 2, 8, 32          # batch, tokens, embedding
    H = 4                       # num_heads (emb_size % num_heads == 0)
    DEPTH = 2
    N_CLASSES = 16

    key = jax.random.PRNGKey(0)
    kx, kp = jax.random.split(key)
    x = jax.random.normal(kx, (B, N, E), jnp.float32)
    params = make_params(kp, E, DEPTH, H, N_CLASSES)

    fwd = jax.jit(server_model_vit, static_argnums=(2,))
    logits = fwd(x, params, H)
    logits = jax.block_until_ready(logits)
    assert logits.shape == (B, N_CLASSES)
    assert bool(jnp.all(jnp.isfinite(logits)))
    print("KERNEL_OK")
</pallas_src>

<mosaic_0001>
module attributes {stable_mosaic.version = 11 : i64} {
  func.func @head_kernel(%arg0: i32, %arg1: memref<1x8x32xf32, #tpu.memory_space<vmem>>, %arg2: memref<1x32xf32, #tpu.memory_space<vmem>>, %arg3: memref<1x32xf32, #tpu.memory_space<vmem>>, %arg4: memref<32x16xbf16, #tpu.memory_space<vmem>>, %arg5: memref<1x16xf32, #tpu.memory_space<vmem>>, %arg6: memref<1x1x16xf32, #tpu.memory_space<vmem>>) attributes {dimension_semantics = [#tpu.dimension_semantics<parallel>], iteration_bounds = array<i64: 2>, scalar_prefetch = 0 : i64, scratch_operands = 0 : i64, tpu.core_type = #tpu.core_type<tc>, window_params = [{transform_indices = @transform_0, window_bounds = array<i64: 1, 8, 32>}, {pipeline_mode = #tpu.pipeline_mode<synchronous>, transform_indices = @transform_1, window_bounds = array<i64: 1, 32>}, {pipeline_mode = #tpu.pipeline_mode<synchronous>, transform_indices = @transform_2, window_bounds = array<i64: 1, 32>}, {pipeline_mode = #tpu.pipeline_mode<synchronous>, transform_indices = @transform_3, window_bounds = array<i64: 32, 16>}, {pipeline_mode = #tpu.pipeline_mode<synchronous>, transform_indices = @transform_4, window_bounds = array<i64: 1, 16>}, {transform_indices = @transform_5, window_bounds = array<i64: 1, 1, 16>}]} {
    %c0 = arith.constant 0 : index
    %c0_0 = arith.constant 0 : index
    %c0_1 = arith.constant 0 : index
    %0 = vector.load %arg1[%c0, %c0_0, %c0_1] : memref<1x8x32xf32, #tpu.memory_space<vmem>>, vector<1x8x32xf32>
    %1 = vector.shape_cast %0 : vector<1x8x32xf32> to vector<8x32xf32>
    %cst = arith.constant dense<0.000000e+00> : vector<32xf32>
    %2 = vector.multi_reduction <add>, %1, %cst [0] : vector<8x32xf32> to vector<32xf32>
    %3 = vector.shape_cast %2 : vector<32xf32> to vector<1x32xf32>
    %cst_2 = arith.constant 8.000000e+00 : f32
    %4 = vector.broadcast %cst_2 : f32 to vector<1x32xf32>
    %5 = arith.divf %3, %4 : vector<1x32xf32>
    %c0_3 = arith.constant 0 : index
    %c0_4 = arith.constant 0 : index
    %6 = vector.load %arg2[%c0_3, %c0_4] : memref<1x32xf32, #tpu.memory_space<vmem>>, vector<1x32xf32>
    %c0_5 = arith.constant 0 : index
    %c0_6 = arith.constant 0 : index
    %7 = vector.load %arg3[%c0_5, %c0_6] : memref<1x32xf32, #tpu.memory_space<vmem>>, vector<1x32xf32>
    %cst_7 = arith.constant dense<0.000000e+00> : vector<1xf32>
    %8 = vector.multi_reduction <add>, %5, %cst_7 [1] : vector<1x32xf32> to vector<1xf32>
    %9 = vector.shape_cast %8 : vector<1xf32> to vector<1x1xf32>
    %cst_8 = arith.constant 3.200000e+01 : f32
    %10 = vector.broadcast %cst_8 : f32 to vector<1x1xf32>
    %11 = arith.divf %9, %10 : vector<1x1xf32>
    %12 = vector.broadcast %11 : vector<1x1xf32> to vector<1x32xf32>
    %13 = arith.subf %5, %12 : vector<1x32xf32>
    %14 = arith.mulf %13, %13 : vector<1x32xf32>
    %cst_9 = arith.constant dense<0.000000e+00> : vector<1xf32>
    %15 = vector.multi_reduction <add>, %14, %cst_9 [1] : vector<1x32xf32> to vector<1xf32>
    %16 = vector.shape_cast %15 : vector<1xf32> to vector<1x1xf32>
    %cst_10 = arith.constant 3.200000e+01 : f32
    %17 = vector.broadcast %cst_10 : f32 to vector<1x1xf32>
    %18 = arith.divf %16, %17 : vector<1x1xf32>
    %19 = vector.broadcast %11 : vector<1x1xf32> to vector<1x32xf32>
    %20 = arith.subf %5, %19 : vector<1x32xf32>
    %cst_11 = arith.constant 9.99999974E-6 : f32
    %21 = vector.broadcast %cst_11 : f32 to vector<1x1xf32>
    %22 = arith.addf %18, %21 : vector<1x1xf32>
    %23 = math.rsqrt %22 : vector<1x1xf32>
    %24 = vector.broadcast %23 : vector<1x1xf32> to vector<1x32xf32>
    %25 = arith.mulf %20, %24 : vector<1x32xf32>
    %26 = arith.mulf %25, %6 : vector<1x32xf32>
    %27 = arith.addf %26, %7 : vector<1x32xf32>
    %28 = arith.truncf %27 : vector<1x32xf32> to vector<1x32xbf16>
    %c0_12 = arith.constant 0 : index
    %c0_13 = arith.constant 0 : index
    %29 = vector.load %arg4[%c0_12, %c0_13] : memref<32x16xbf16, #tpu.memory_space<vmem>>, vector<32x16xbf16>
    %cst_14 = arith.constant dense<0.000000e+00> : vector<1x16xf32>
    %30 = tpu.matmul %28, %29, %cst_14 {dimension_numbers = #tpu.dot_dimension_numbers<[1], [0], [0], [1], [0, 0, 1, 1], [], []>} : vector<1x32xbf16>, vector<32x16xbf16>, vector<1x16xf32> -> vector<1x16xf32>
    %c0_15 = arith.constant 0 : index
    %c0_16 = arith.constant 0 : index
    %31 = vector.load %arg5[%c0_15, %c0_16] : memref<1x16xf32, #tpu.memory_space<vmem>>, vector<1x16xf32>
    %32 = arith.addf %30, %31 : vector<1x16xf32>
    %c0_17 = arith.constant 0 : index
    %c0_18 = arith.constant 0 : index
    %c0_19 = arith.constant 0 : index
    %33 = vector.load %arg6[%c0_17, %c0_18, %c0_19] : memref<1x1x16xf32, #tpu.memory_space<vmem>>, vector<1x1x16xf32>
    %34 = vector.shape_cast %33 : vector<1x1x16xf32> to vector<1x16xf32>
    %35 = vector.shape_cast %32 : vector<1x16xf32> to vector<1x1x16xf32>
    tpu.vector_store %arg6[%c0_17, %c0_18, %c0_19], %35 {strides = array<i32>} : memref<1x1x16xf32, #tpu.memory_space<vmem>>, vector<1x1x16xf32>,
    return
  }
  func.func @transform_0(%arg0: i32) -> (i32, i32, i32) {
    %c0_i32 = arith.constant 0 : i32
    %c0_i32_0 = arith.constant 0 : i32
    %c0_i32_1 = arith.constant 0 : i32
    return %arg0, %c0_i32, %c0_i32_0 : i32, i32, i32
  }
  func.func @transform_1(%arg0: i32) -> (i32, i32) {
    %c0_i32 = arith.constant 0 : i32
    %c0_i32_0 = arith.constant 0 : i32
    %c0_i32_1 = arith.constant 0 : i32
    return %c0_i32, %c0_i32_0 : i32, i32
  }
  func.func @transform_2(%arg0: i32) -> (i32, i32) {
    %c0_i32 = arith.constant 0 : i32
    %c0_i32_0 = arith.constant 0 : i32
    %c0_i32_1 = arith.constant 0 : i32
    return %c0_i32, %c0_i32_0 : i32, i32
  }
  func.func @transform_3(%arg0: i32) -> (i32, i32) {
    %c0_i32 = arith.constant 0 : i32
    %c0_i32_0 = arith.constant 0 : i32
    %c0_i32_1 = arith.constant 0 : i32
    return %c0_i32, %c0_i32_0 : i32, i32
  }
  func.func @transform_4(%arg0: i32) -> (i32, i32) {
    %c0_i32 = arith.constant 0 : i32
    %c0_i32_0 = arith.constant 0 : i32
    %c0_i32_1 = arith.constant 0 : i32
    return %c0_i32, %c0_i32_0 : i32, i32
  }
  func.func @transform_5(%arg0: i32) -> (i32, i32, i32) {
    %c0_i32 = arith.constant 0 : i32
    %c0_i32_0 = arith.constant 0 : i32
    %c0_i32_1 = arith.constant 0 : i32
    return %arg0, %c0_i32, %c0_i32_0 : i32, i32, i32
  }
}

module attributes {stable_mosaic.version = 11 : i64} {
  func.func @encoder_kernel(%arg0: i32, %arg1: i32, %arg2: memref<1x8x32xf32, #tpu.memory_space<vmem>>, %arg3: memref<1x1x32xf32, #tpu.memory_space<vmem>>, %arg4: memref<1x1x32xf32, #tpu.memory_space<vmem>>, %arg5: memref<1x32x32xbf16, #tpu.memory_space<vmem>>, %arg6: memref<1x1x32xf32, #tpu.memory_space<vmem>>, %arg7: memref<1x32x32xbf16, #tpu.memory_space<vmem>>, %arg8: memref<1x1x32xf32, #tpu.memory_space<vmem>>, %arg9: memref<1x32x32xbf16, #tpu.memory_space<vmem>>, %arg10: memref<1x1x32xf32, #tpu.memory_space<vmem>>, %arg11: memref<1x32x32xbf16, #tpu.memory_space<vmem>>, %arg12: memref<1x1x32xf32, #tpu.memory_space<vmem>>, %arg13: memref<1x1x32xf32, #tpu.memory_space<vmem>>, %arg14: memref<1x1x32xf32, #tpu.memory_space<vmem>>, %arg15: memref<1x32x128xbf16, #tpu.memory_space<vmem>>, %arg16: memref<1x1x128xf32, #tpu.memory_space<vmem>>, %arg17: memref<1x128x32xbf16, #tpu.memory_space<vmem>>, %arg18: memref<1x1x32xf32, #tpu.memory_space<vmem>>, %arg19: memref<1x8x32xf32, #tpu.memory_space<vmem>>) attributes {dimension_semantics = [#tpu.dimension_semantics<parallel>, #tpu.dimension_semantics<arbitrary>], iteration_bounds = array<i64: 2, 2>, scalar_prefetch = 0 : i64, scratch_operands = 0 : i64, tpu.core_type = #tpu.core_type<tc>, window_params = [{transform_indices = @transform_0, window_bounds = array<i64: 1, 8, 32>}, {transform_indices = @transform_1, window_bounds = array<i64: 1, 1, 32>}, {transform_indices = @transform_2, window_bounds = array<i64: 1, 1, 32>}, {transform_indices = @transform_3, window_bounds = array<i64: 1, 32, 32>}, {transform_indices = @transform_4, window_bounds = array<i64: 1, 1, 32>}, {transform_indices = @transform_5, window_bounds = array<i64: 1, 32, 32>}, {transform_indices = @transform_6, window_bounds = array<i64: 1, 1, 32>}, {transform_indices = @transform_7, window_bounds = array<i64: 1, 32, 32>}, {transform_indices = @transform_8, window_bounds = array<i64: 1, 1, 32>}, {transform_indices = @transform_9, window_bounds = array<i64: 1, 32, 32>}, {transform_indices = @transform_10, window_bounds = array<i64: 1, 1, 32>}, {transform_indices = @transform_11, window_bounds = array<i64: 1, 1, 32>}, {transform_indices = @transform_12, window_bounds = array<i64: 1, 1, 32>}, {transform_indices = @transform_13, window_bounds = array<i64: 1, 32, 128>}, {transform_indices = @transform_14, window_bounds = array<i64: 1, 1, 128>}, {transform_indices = @transform_15, window_bounds = array<i64: 1, 128, 32>}, {transform_indices = @transform_16, window_bounds = array<i64: 1, 1, 32>}, {transform_indices = @transform_17, window_bounds = array<i64: 1, 8, 32>}]} {
    %c0_i32 = arith.constant 0 : i32
    %0 = arith.cmpi eq, %arg1, %c0_i32 : i32
    %1 = arith.extui %0 : i1 to i32
    %c0_i32_0 = arith.constant 0 : i32
    %2 = arith.cmpi ne, %1, %c0_i32_0 : i32
    scf.if %2 {
      %c0_77 = arith.constant 0 : index
      %c0_78 = arith.constant 0 : index
      %c0_79 = arith.constant 0 : index
      %170 = vector.load %arg2[%c0_77, %c0_78, %c0_79] : memref<1x8x32xf32, #tpu.memory_space<vmem>>, vector<1x8x32xf32>
      %c0_80 = arith.constant 0 : index
      %c0_81 = arith.constant 0 : index
      %c0_82 = arith.constant 0 : index
      %171 = vector.load %arg19[%c0_80, %c0_81, %c0_82] : memref<1x8x32xf32, #tpu.memory_space<vmem>>, vector<1x8x32xf32>
      tpu.vector_store %arg19[%c0_80, %c0_81, %c0_82], %170 {strides = array<i32>} : memref<1x8x32xf32, #tpu.memory_space<vmem>>, vector<1x8x32xf32>,
    } else {
    }
    %c0 = arith.constant 0 : index
    %c0_1 = arith.constant 0 : index
    %c0_2 = arith.constant 0 : index
    %3 = vector.load %arg19[%c0, %c0_1, %c0_2] : memref<1x8x32xf32, #tpu.memory_space<vmem>>, vector<1x8x32xf32>
    %4 = vector.shape_cast %3 : vector<1x8x32xf32> to vector<8x32xf32>
    %c0_3 = arith.constant 0 : index
    %c0_4 = arith.constant 0 : index
    %c0_5 = arith.constant 0 : index
    %5 = vector.load %arg3[%c0_3, %c0_4, %c0_5] : memref<1x1x32xf32, #tpu.memory_space<vmem>>, vector<1x1x32xf32>
    %6 = vector.shape_cast %5 : vector<1x1x32xf32> to vector<1x32xf32>
    %c0_6 = arith.constant 0 : index
    %c0_7 = arith.constant 0 : index
    %c0_8 = arith.constant 0 : index
    %7 = vector.load %arg4[%c0_6, %c0_7, %c0_8] : memref<1x1x32xf32, #tpu.memory_space<vmem>>, vector<1x1x32xf32>
    %8 = vector.shape_cast %7 : vector<1x1x32xf32> to vector<1x32xf32>
    %cst = arith.constant dense<0.000000e+00> : vector<8xf32>
    %9 = vector.multi_reduction <add>, %4, %cst [1] : vector<8x32xf32> to vector<8xf32>
    %10 = vector.shape_cast %9 : vector<8xf32> to vector<8x1xf32>
    %cst_9 = arith.constant 3.200000e+01 : f32
    %11 = vector.broadcast %cst_9 : f32 to vector<8x1xf32>
    %12 = arith.divf %10, %11 : vector<8x1xf32>
    %13 = vector.broadcast %12 : vector<8x1xf32> to vector<8x32xf32>
    %14 = arith.subf %4, %13 : vector<8x32xf32>
    %15 = arith.mulf %14, %14 : vector<8x32xf32>
    %cst_10 = arith.constant dense<0.000000e+00> : vector<8xf32>
    %16 = vector.multi_reduction <add>, %15, %cst_10 [1] : vector<8x32xf32> to vector<8xf32>
    %17 = vector.shape_cast %16 : vector<8xf32> to vector<8x1xf32>
    %cst_11 = arith.constant 3.200000e+01 : f32
    %18 = vector.broadcast %cst_11 : f32 to vector<8x1xf32>
    %19 = arith.divf %17, %18 : vector<8x1xf32>
    %20 = vector.broadcast %12 : vector<8x1xf32> to vector<8x32xf32>
    %21 = arith.subf %4, %20 : vector<8x32xf32>
    %cst_12 = arith.constant 9.99999974E-6 : f32
    %22 = vector.broadcast %cst_12 : f32 to vector<8x1xf32>
    %23 = arith.addf %19, %22 : vector<8x1xf32>
    %24 = math.rsqrt %23 : vector<8x1xf32>
    %25 = vector.broadcast %24 : vector<8x1xf32> to vector<8x32xf32>
    %26 = arith.mulf %21, %25 : vector<8x32xf32>
    %27 = vector.broadcast %6 : vector<1x32xf32> to vector<8x32xf32>
    %28 = arith.mulf %26, %27 : vector<8x32xf32>
    %29 = vector.broadcast %8 : vector<1x32xf32> to vector<8x32xf32>
    %30 = arith.addf %28, %29 : vector<8x32xf32>
    %31 = arith.truncf %30 : vector<8x32xf32> to vector<8x32xbf16>
    %c0_13 = arith.constant 0 : index
    %c0_14 = arith.constant 0 : index
    %c0_15 = arith.constant 0 : index
    %32 = vector.load %arg5[%c0_13, %c0_14, %c0_15] : memref<1x32x32xbf16, #tpu.memory_space<vmem>>, vector<1x32x32xbf16>
    %33 = vector.shape_cast %32 : vector<1x32x32xbf16> to vector<32x32xbf16>
    %cst_16 = arith.constant dense<0.000000e+00> : vector<8x32xf32>
    %34 = tpu.matmul %31, %33, %cst_16 {dimension_numbers = #tpu.dot_dimension_numbers<[1], [0], [0], [1], [0, 0, 1, 1], [], []>} : vector<8x32xbf16>, vector<32x32xbf16>, vector<8x32xf32> -> vector<8x32xf32>
    %c0_17 = arith.constant 0 : index
    %c0_18 = arith.constant 0 : index
    %c0_19 = arith.constant 0 : index
    %35 = vector.load %arg6[%c0_17, %c0_18, %c0_19] : memref<1x1x32xf32, #tpu.memory_space<vmem>>, vector<1x1x32xf32>
    %36 = vector.shape_cast %35 : vector<1x1x32xf32> to vector<1x32xf32>
    %37 = vector.broadcast %36 : vector<1x32xf32> to vector<8x32xf32>
    %38 = arith.addf %34, %37 : vector<8x32xf32>
    %c0_20 = arith.constant 0 : index
    %c0_21 = arith.constant 0 : index
    %c0_22 = arith.constant 0 : index
    %39 = vector.load %arg7[%c0_20, %c0_21, %c0_22] : memref<1x32x32xbf16, #tpu.memory_space<vmem>>, vector<1x32x32xbf16>
    %40 = vector.shape_cast %39 : vector<1x32x32xbf16> to vector<32x32xbf16>
    %cst_23 = arith.constant dense<0.000000e+00> : vector<8x32xf32>
    %41 = tpu.matmul %31, %40, %cst_23 {dimension_numbers = #tpu.dot_dimension_numbers<[1], [0], [0], [1], [0, 0, 1, 1], [], []>} : vector<8x32xbf16>, vector<32x32xbf16>, vector<8x32xf32> -> vector<8x32xf32>
    %c0_24 = arith.constant 0 : index
    %c0_25 = arith.constant 0 : index
    %c0_26 = arith.constant 0 : index
    %42 = vector.load %arg8[%c0_24, %c0_25, %c0_26] : memref<1x1x32xf32, #tpu.memory_space<vmem>>, vector<1x1x32xf32>
    %43 = vector.shape_cast %42 : vector<1x1x32xf32> to vector<1x32xf32>
    %44 = vector.broadcast %43 : vector<1x32xf32> to vector<8x32xf32>
    %45 = arith.addf %41, %44 : vector<8x32xf32>
    %c0_27 = arith.constant 0 : index
    %c0_28 = arith.constant 0 : index
    %c0_29 = arith.constant 0 : index
    %46 = vector.load %arg9[%c0_27, %c0_28, %c0_29] : memref<1x32x32xbf16, #tpu.memory_space<vmem>>, vector<1x32x32xbf16>
    %47 = vector.shape_cast %46 : vector<1x32x32xbf16> to vector<32x32xbf16>
    %cst_30 = arith.constant dense<0.000000e+00> : vector<8x32xf32>
    %48 = tpu.matmul %31, %47, %cst_30 {dimension_numbers = #tpu.dot_dimension_numbers<[1], [0], [0], [1], [0, 0, 1, 1], [], []>} : vector<8x32xbf16>, vector<32x32xbf16>, vector<8x32xf32> -> vector<8x32xf32>
    %c0_31 = arith.constant 0 : index
    %c0_32 = arith.constant 0 : index
    %c0_33 = arith.constant 0 : index
    %49 = vector.load %arg10[%c0_31, %c0_32, %c0_33] : memref<1x1x32xf32, #tpu.memory_space<vmem>>, vector<1x1x32xf32>
    %50 = vector.shape_cast %49 : vector<1x1x32xf32> to vector<1x32xf32>
    %51 = vector.broadcast %50 : vector<1x32xf32> to vector<8x32xf32>
    %52 = arith.addf %48, %51 : vector<8x32xf32>
    %53 = vector.extract_strided_slice %38 {offsets = [0, 0], sizes = [8, 8], strides = [1, 1]} : vector<8x32xf32> to vector<8x8xf32>
    %54 = vector.extract_strided_slice %38 {offsets = [0, 8], sizes = [8, 8], strides = [1, 1]} : vector<8x32xf32> to vector<8x8xf32>
    %55 = vector.extract_strided_slice %38 {offsets = [0, 16], sizes = [8, 8], strides = [1, 1]} : vector<8x32xf32> to vector<8x8xf32>
    %56 = vector.extract_strided_slice %38 {offsets = [0, 24], sizes = [8, 8], strides = [1, 1]} : vector<8x32xf32> to vector<8x8xf32>
    %57 = vector.shape_cast %53 : vector<8x8xf32> to vector<1x8x8xf32>
    %58 = vector.shape_cast %54 : vector<8x8xf32> to vector<1x8x8xf32>
    %59 = vector.shape_cast %55 : vector<8x8xf32> to vector<1x8x8xf32>
    %60 = vector.shape_cast %56 : vector<8x8xf32> to vector<1x8x8xf32>
    %61 = tpu.concatenate %57, %58, %59, %60 in 0 : vector<1x8x8xf32>, vector<1x8x8xf32>, vector<1x8x8xf32>, vector<1x8x8xf32> -> vector<4x8x8xf32>
    %62 = arith.truncf %61 : vector<4x8x8xf32> to vector<4x8x8xbf16>
    %63 = vector.extract_strided_slice %45 {offsets = [0, 0], sizes = [8, 8], strides = [1, 1]} : vector<8x32xf32> to vector<8x8xf32>
    %64 = vector.extract_strided_slice %45 {offsets = [0, 8], sizes = [8, 8], strides = [1, 1]} : vector<8x32xf32> to vector<8x8xf32>
    %65 = vector.extract_strided_slice %45 {offsets = [0, 16], sizes = [8, 8], strides = [1, 1]} : vector<8x32xf32> to vector<8x8xf32>
    %66 = vector.extract_strided_slice %45 {offsets = [0, 24], sizes = [8, 8], strides = [1, 1]} : vector<8x32xf32> to vector<8x8xf32>
    %67 = vector.shape_cast %63 : vector<8x8xf32> to vector<1x8x8xf32>
    %68 = vector.shape_cast %64 : vector<8x8xf32> to vector<1x8x8xf32>
    %69 = vector.shape_cast %65 : vector<8x8xf32> to vector<1x8x8xf32>
    %70 = vector.shape_cast %66 : vector<8x8xf32> to vector<1x8x8xf32>
    %71 = tpu.concatenate %67, %68, %69, %70 in 0 : vector<1x8x8xf32>, vector<1x8x8xf32>, vector<1x8x8xf32>, vector<1x8x8xf32> -> vector<4x8x8xf32>
    %72 = arith.truncf %71 : vector<4x8x8xf32> to vector<4x8x8xbf16>
    %73 = vector.extract_strided_slice %52 {offsets = [0, 0], sizes = [8, 8], strides = [1, 1]} : vector<8x32xf32> to vector<8x8xf32>
    %74 = vector.extract_strided_slice %52 {offsets = [0, 8], sizes = [8, 8], strides = [1, 1]} : vector<8x32xf32> to vector<8x8xf32>
    %75 = vector.extract_strided_slice %52 {offsets = [0, 16], sizes = [8, 8], strides = [1, 1]} : vector<8x32xf32> to vector<8x8xf32>
    %76 = vector.extract_strided_slice %52 {offsets = [0, 24], sizes = [8, 8], strides = [1, 1]} : vector<8x32xf32> to vector<8x8xf32>
    %77 = vector.shape_cast %73 : vector<8x8xf32> to vector<1x8x8xf32>
    %78 = vector.shape_cast %74 : vector<8x8xf32> to vector<1x8x8xf32>
    %79 = vector.shape_cast %75 : vector<8x8xf32> to vector<1x8x8xf32>
    %80 = vector.shape_cast %76 : vector<8x8xf32> to vector<1x8x8xf32>
    %81 = tpu.concatenate %77, %78, %79, %80 in 0 : vector<1x8x8xf32>, vector<1x8x8xf32>, vector<1x8x8xf32>, vector<1x8x8xf32> -> vector<4x8x8xf32>
    %82 = arith.truncf %81 : vector<4x8x8xf32> to vector<4x8x8xbf16>
    "tpu.trace_start"() <{level = 10 : i32, message = "hqd,hkd->hqk"}> : () -> ()
    %cst_34 = arith.constant dense<0.000000e+00> : vector<4x8x8xf32>
    %83 = tpu.matmul %62, %72, %cst_34 {dimension_numbers = #tpu.dot_dimension_numbers<[2], [2], [1], [1], [0, 0, 0, 1, 1, 1], [0], [0]>} : vector<4x8x8xbf16>, vector<4x8x8xbf16>, vector<4x8x8xf32> -> vector<4x8x8xf32>
    "tpu.trace_stop"() : () -> ()
    %cst_35 = arith.constant dense<0xFF800000> : vector<4x8xf32>
    %84 = vector.multi_reduction <maximumf>, %83, %cst_35 [2] : vector<4x8x8xf32> to vector<4x8xf32>
    %85 = vector.shape_cast %84 : vector<4x8xf32> to vector<4x8x1xf32>
    %86 = vector.broadcast %85 : vector<4x8x1xf32> to vector<4x8x8xf32>
    %87 = arith.subf %83, %86 : vector<4x8x8xf32>
    %88 = math.exp %87 : vector<4x8x8xf32>
    %cst_36 = arith.constant dense<0.000000e+00> : vector<4x8xf32>
    %89 = vector.multi_reduction <add>, %88, %cst_36 [2] : vector<4x8x8xf32> to vector<4x8xf32>
    %90 = vector.shape_cast %89 : vector<4x8xf32> to vector<4x8x1xf32>
    %91 = tpu.reciprocal %90 {approx = true} : vector<4x8x1xf32> -> vector<4x8x1xf32>
    %cst_37 = arith.constant 0.176776692 : f32
    %92 = vector.broadcast %cst_37 : f32 to vector<4x8x1xf32>
    %93 = arith.mulf %91, %92 : vector<4x8x1xf32>
    %94 = vector.broadcast %93 : vector<4x8x1xf32> to vector<4x8x8xf32>
    %95 = arith.mulf %88, %94 : vector<4x8x8xf32>
    %96 = arith.truncf %95 : vector<4x8x8xf32> to vector<4x8x8xbf16>
    "tpu.trace_start"() <{level = 10 : i32, message = "hqk,hkd->hqd"}> : () -> ()
    %cst_38 = arith.constant dense<0.000000e+00> : vector<4x8x8xf32>
    %97 = tpu.matmul %96, %82, %cst_38 {dimension_numbers = #tpu.dot_dimension_numbers<[2], [1], [1], [2], [0, 0, 0, 1, 1, 2], [0], [0]>} : vector<4x8x8xbf16>, vector<4x8x8xbf16>, vector<4x8x8xf32> -> vector<4x8x8xf32>
    "tpu.trace_stop"() : () -> ()
    %98 = vector.extract_strided_slice %97 {offsets = [0, 0, 0], sizes = [1, 8, 8], strides = [1, 1, 1]} : vector<4x8x8xf32> to vector<1x8x8xf32>
    %99 = vector.shape_cast %98 : vector<1x8x8xf32> to vector<8x8xf32>
    %100 = vector.extract_strided_slice %97 {offsets = [1, 0, 0], sizes = [1, 8, 8], strides = [1, 1, 1]} : vector<4x8x8xf32> to vector<1x8x8xf32>
    %101 = vector.shape_cast %100 : vector<1x8x8xf32> to vector<8x8xf32>
    %102 = vector.extract_strided_slice %97 {offsets = [2, 0, 0], sizes = [1, 8, 8], strides = [1, 1, 1]} : vector<4x8x8xf32> to vector<1x8x8xf32>
    %103 = vector.shape_cast %102 : vector<1x8x8xf32> to vector<8x8xf32>
    %104 = vector.extract_strided_slice %97 {offsets = [3, 0, 0], sizes = [1, 8, 8], strides = [1, 1, 1]} : vector<4x8x8xf32> to vector<1x8x8xf32>
    %105 = vector.shape_cast %104 : vector<1x8x8xf32> to vector<8x8xf32>
    %106 = tpu.concatenate %99, %101, %103, %105 in 1 : vector<8x8xf32>, vector<8x8xf32>, vector<8x8xf32>, vector<8x8xf32> -> vector<8x32xf32>
    %107 = arith.truncf %106 : vector<8x32xf32> to vector<8x32xbf16>
    %c0_39 = arith.constant 0 : index
    %c0_40 = arith.constant 0 : index
    %c0_41 = arith.constant 0 : index
    %108 = vector.load %arg11[%c0_39, %c0_40, %c0_41] : memref<1x32x32xbf16, #tpu.memory_space<vmem>>, vector<1x32x32xbf16>
    %109 = vector.shape_cast %108 : vector<1x32x32xbf16> to vector<32x32xbf16>
    %cst_42 = arith.constant dense<0.000000e+00> : vector<8x32xf32>
    %110 = tpu.matmul %107, %109, %cst_42 {dimension_numbers = #tpu.dot_dimension_numbers<[1], [0], [0], [1], [0, 0, 1, 1], [], []>} : vector<8x32xbf16>, vector<32x32xbf16>, vector<8x32xf32> -> vector<8x32xf32>
    %c0_43 = arith.constant 0 : index
    %c0_44 = arith.constant 0 : index
    %c0_45 = arith.constant 0 : index
    %111 = vector.load %arg12[%c0_43, %c0_44, %c0_45] : memref<1x1x32xf32, #tpu.memory_space<vmem>>, vector<1x1x32xf32>
    %112 = vector.shape_cast %111 : vector<1x1x32xf32> to vector<1x32xf32>
    %113 = vector.broadcast %112 : vector<1x32xf32> to vector<8x32xf32>
    %114 = arith.addf %110, %113 : vector<8x32xf32>
    %115 = arith.addf %4, %114 : vector<8x32xf32>
    %c0_46 = arith.constant 0 : index
    %c0_47 = arith.constant 0 : index
    %c0_48 = arith.constant 0 : index
    %116 = vector.load %arg13[%c0_46, %c0_47, %c0_48] : memref<1x1x32xf32, #tpu.memory_space<vmem>>, vector<1x1x32xf32>
    %117 = vector.shape_cast %116 : vector<1x1x32xf32> to vector<1x32xf32>
    %c0_49 = arith.constant 0 : index
    %c0_50 = arith.constant 0 : index
    %c0_51 = arith.constant 0 : index
    %118 = vector.load %arg14[%c0_49, %c0_50, %c0_51] : memref<1x1x32xf32, #tpu.memory_space<vmem>>, vector<1x1x32xf32>
    %119 = vector.shape_cast %118 : vector<1x1x32xf32> to vector<1x32xf32>
    %cst_52 = arith.constant dense<0.000000e+00> : vector<8xf32>
    %120 = vector.multi_reduction <add>, %115, %cst_52 [1] : vector<8x32xf32> to vector<8xf32>
    %121 = vector.shape_cast %120 : vector<8xf32> to vector<8x1xf32>
    %cst_53 = arith.constant 3.200000e+01 : f32
    %122 = vector.broadcast %cst_53 : f32 to vector<8x1xf32>
    %123 = arith.divf %121, %122 : vector<8x1xf32>
    %124 = vector.broadcast %123 : vector<8x1xf32> to vector<8x32xf32>
    %125 = arith.subf %115, %124 : vector<8x32xf32>
    %126 = arith.mulf %125, %125 : vector<8x32xf32>
    %cst_54 = arith.constant dense<0.000000e+00> : vector<8xf32>
    %127 = vector.multi_reduction <add>, %126, %cst_54 [1] : vector<8x32xf32> to vector<8xf32>
    %128 = vector.shape_cast %127 : vector<8xf32> to vector<8x1xf32>
    %cst_55 = arith.constant 3.200000e+01 : f32
    %129 = vector.broadcast %cst_55 : f32 to vector<8x1xf32>
    %130 = arith.divf %128, %129 : vector<8x1xf32>
    %131 = vector.broadcast %123 : vector<8x1xf32> to vector<8x32xf32>
    %132 = arith.subf %115, %131 : vector<8x32xf32>
    %cst_56 = arith.constant 9.99999974E-6 : f32
    %133 = vector.broadcast %cst_56 : f32 to vector<8x1xf32>
    %134 = arith.addf %130, %133 : vector<8x1xf32>
    %135 = math.rsqrt %134 : vector<8x1xf32>
    %136 = vector.broadcast %135 : vector<8x1xf32> to vector<8x32xf32>
    %137 = arith.mulf %132, %136 : vector<8x32xf32>
    %138 = vector.broadcast %117 : vector<1x32xf32> to vector<8x32xf32>
    %139 = arith.mulf %137, %138 : vector<8x32xf32>
    %140 = vector.broadcast %119 : vector<1x32xf32> to vector<8x32xf32>
    %141 = arith.addf %139, %140 : vector<8x32xf32>
    %142 = arith.truncf %141 : vector<8x32xf32> to vector<8x32xbf16>
    %c0_57 = arith.constant 0 : index
    %c0_58 = arith.constant 0 : index
    %c0_59 = arith.constant 0 : index
    %143 = vector.load %arg15[%c0_57, %c0_58, %c0_59] : memref<1x32x128xbf16, #tpu.memory_space<vmem>>, vector<1x32x128xbf16>
    %144 = vector.shape_cast %143 : vector<1x32x128xbf16> to vector<32x128xbf16>
    %cst_60 = arith.constant dense<0.000000e+00> : vector<8x128xf32>
    %145 = tpu.matmul %142, %144, %cst_60 {dimension_numbers = #tpu.dot_dimension_numbers<[1], [0], [0], [1], [0, 0, 1, 1], [], []>} : vector<8x32xbf16>, vector<32x128xbf16>, vector<8x128xf32> -> vector<8x128xf32>
    %c0_61 = arith.constant 0 : index
    %c0_62 = arith.constant 0 : index
    %c0_63 = arith.constant 0 : index
    %146 = vector.load %arg16[%c0_61, %c0_62, %c0_63] : memref<1x1x128xf32, #tpu.memory_space<vmem>>, vector<1x1x128xf32>
    %147 = vector.shape_cast %146 : vector<1x1x128xf32> to vector<1x128xf32>
    %148 = vector.broadcast %147 : vector<1x128xf32> to vector<8x128xf32>
    %149 = arith.addf %145, %148 : vector<8x128xf32>
    %cst_64 = arith.constant 5.000000e-01 : f32
    %150 = vector.broadcast %cst_64 : f32 to vector<8x128xf32>
    %151 = arith.mulf %150, %149 : vector<8x128xf32>
    %cst_65 = arith.constant 0.707106769 : f32
    %152 = vector.broadcast %cst_65 : f32 to vector<8x128xf32>
    %153 = arith.mulf %149, %152 : vector<8x128xf32>
    %154 = math.erf %153 : vector<8x128xf32>
    %cst_66 = arith.constant 1.000000e+00 : f32
    %155 = vector.broadcast %cst_66 : f32 to vector<8x128xf32>
    %156 = arith.addf %155, %154 : vector<8x128xf32>
    %157 = arith.mulf %151, %156 : vector<8x128xf32>
    %158 = arith.truncf %157 : vector<8x128xf32> to vector<8x128xbf16>
    %c0_67 = arith.constant 0 : index
    %c0_68 = arith.constant 0 : index
    %c0_69 = arith.constant 0 : index
    %159 = vector.load %arg17[%c0_67, %c0_68, %c0_69] : memref<1x128x32xbf16, #tpu.memory_space<vmem>>, vector<1x128x32xbf16>
    %160 = vector.shape_cast %159 : vector<1x128x32xbf16> to vector<128x32xbf16>
    %cst_70 = arith.constant dense<0.000000e+00> : vector<8x32xf32>
    %161 = tpu.matmul %158, %160, %cst_70 {dimension_numbers = #tpu.dot_dimension_numbers<[1], [0], [0], [1], [0, 0, 1, 1], [], []>} : vector<8x128xbf16>, vector<128x32xbf16>, vector<8x32xf32> -> vector<8x32xf32>
    %c0_71 = arith.constant 0 : index
    %c0_72 = arith.constant 0 : index
    %c0_73 = arith.constant 0 : index
    %162 = vector.load %arg18[%c0_71, %c0_72, %c0_73] : memref<1x1x32xf32, #tpu.memory_space<vmem>>, vector<1x1x32xf32>
    %163 = vector.shape_cast %162 : vector<1x1x32xf32> to vector<1x32xf32>
    %164 = vector.broadcast %163 : vector<1x32xf32> to vector<8x32xf32>
    %165 = arith.addf %161, %164 : vector<8x32xf32>
    %166 = arith.addf %115, %165 : vector<8x32xf32>
    %c0_74 = arith.constant 0 : index
    %c0_75 = arith.constant 0 : index
    %c0_76 = arith.constant 0 : index
    %167 = vector.load %arg19[%c0_74, %c0_75, %c0_76] : memref<1x8x32xf32, #tpu.memory_space<vmem>>, vector<1x8x32xf32>
    %168 = vector.shape_cast %167 : vector<1x8x32xf32> to vector<8x32xf32>
    %169 = vector.shape_cast %166 : vector<8x32xf32> to vector<1x8x32xf32>
    tpu.vector_store %arg19[%c0_74, %c0_75, %c0_76], %169 {strides = array<i32>} : memref<1x8x32xf32, #tpu.memory_space<vmem>>, vector<1x8x32xf32>,
    return
  }
  func.func @transform_0(%arg0: i32, %arg1: i32) -> (i32, i32, i32) {
    %c0_i32 = arith.constant 0 : i32
    %c0_i32_0 = arith.constant 0 : i32
    %c0_i32_1 = arith.constant 0 : i32
    return %arg0, %c0_i32, %c0_i32_0 : i32, i32, i32
  }
  func.func @transform_1(%arg0: i32, %arg1: i32) -> (i32, i32, i32) {
    %c0_i32 = arith.constant 0 : i32
    %c0_i32_0 = arith.constant 0 : i32
    %c0_i32_1 = arith.constant 0 : i32
    return %arg1, %c0_i32, %c0_i32_0 : i32, i32, i32
  }
  func.func @transform_2(%arg0: i32, %arg1: i32) -> (i32, i32, i32) {
    %c0_i32 = arith.constant 0 : i32
    %c0_i32_0 = arith.constant 0 : i32
    %c0_i32_1 = arith.constant 0 : i32
    return %arg1, %c0_i32, %c0_i32_0 : i32, i32, i32
  }
  func.func @transform_3(%arg0: i32, %arg1: i32) -> (i32, i32, i32) {
    %c0_i32 = arith.constant 0 : i32
    %c0_i32_0 = arith.constant 0 : i32
    %c0_i32_1 = arith.constant 0 : i32
    return %arg1, %c0_i32, %c0_i32_0 : i32, i32, i32
  }
  func.func @transform_4(%arg0: i32, %arg1: i32) -> (i32, i32, i32) {
    %c0_i32 = arith.constant 0 : i32
    %c0_i32_0 = arith.constant 0 : i32
    %c0_i32_1 = arith.constant 0 : i32
    return %arg1, %c0_i32, %c0_i32_0 : i32, i32, i32
  }
  func.func @transform_5(%arg0: i32, %arg1: i32) -> (i32, i32, i32) {
    %c0_i32 = arith.constant 0 : i32
    %c0_i32_0 = arith.constant 0 : i32
    %c0_i32_1 = arith.constant 0 : i32
    return %arg1, %c0_i32, %c0_i32_0 : i32, i32, i32
  }
  func.func @transform_6(%arg0: i32, %arg1: i32) -> (i32, i32, i32) {
    %c0_i32 = arith.constant 0 : i32
    %c0_i32_0 = arith.constant 0 : i32
    %c0_i32_1 = arith.constant 0 : i32
    return %arg1, %c0_i32, %c0_i32_0 : i32, i32, i32
  }
  func.func @transform_7(%arg0: i32, %arg1: i32) -> (i32, i32, i32) {
    %c0_i32 = arith.constant 0 : i32
    %c0_i32_0 = arith.constant 0 : i32
    %c0_i32_1 = arith.constant 0 : i32
    return %arg1, %c0_i32, %c0_i32_0 : i32, i32, i32
  }
  func.func @transform_8(%arg0: i32, %arg1: i32) -> (i32, i32, i32) {
    %c0_i32 = arith.constant 0 : i32
    %c0_i32_0 = arith.constant 0 : i32
    %c0_i32_1 = arith.constant 0 : i32
    return %arg1, %c0_i32, %c0_i32_0 : i32, i32, i32
  }
  func.func @transform_9(%arg0: i32, %arg1: i32) -> (i32, i32, i32) {
    %c0_i32 = arith.constant 0 : i32
    %c0_i32_0 = arith.constant 0 : i32
    %c0_i32_1 = arith.constant 0 : i32
    return %arg1, %c0_i32, %c0_i32_0 : i32, i32, i32
  }
  func.func @transform_10(%arg0: i32, %arg1: i32) -> (i32, i32, i32) {
    %c0_i32 = arith.constant 0 : i32
    %c0_i32_0 = arith.constant 0 : i32
    %c0_i32_1 = arith.constant 0 : i32
    return %arg1, %c0_i32, %c0_i32_0 : i32, i32, i32
  }
  func.func @transform_11(%arg0: i32, %arg1: i32) -> (i32, i32, i32) {
    %c0_i32 = arith.constant 0 : i32
    %c0_i32_0 = arith.constant 0 : i32
    %c0_i32_1 = arith.constant 0 : i32
    return %arg1, %c0_i32, %c0_i32_0 : i32, i32, i32
  }
  func.func @transform_12(%arg0: i32, %arg1: i32) -> (i32, i32, i32) {
    %c0_i32 = arith.constant 0 : i32
    %c0_i32_0 = arith.constant 0 : i32
    %c0_i32_1 = arith.constant 0 : i32
    return %arg1, %c0_i32, %c0_i32_0 : i32, i32, i32
  }
  func.func @transform_13(%arg0: i32, %arg1: i32) -> (i32, i32, i32) {
    %c0_i32 = arith.constant 0 : i32
    %c0_i32_0 = arith.constant 0 : i32
    %c0_i32_1 = arith.constant 0 : i32
    return %arg1, %c0_i32, %c0_i32_0 : i32, i32, i32
  }
  func.func @transform_14(%arg0: i32, %arg1: i32) -> (i32, i32, i32) {
    %c0_i32 = arith.constant 0 : i32
    %c0_i32_0 = arith.constant 0 : i32
    %c0_i32_1 = arith.constant 0 : i32
    return %arg1, %c0_i32, %c0_i32_0 : i32, i32, i32
  }
  func.func @transform_15(%arg0: i32, %arg1: i32) -> (i32, i32, i32) {
    %c0_i32 = arith.constant 0 : i32
    %c0_i32_0 = arith.constant 0 : i32
    %c0_i32_1 = arith.constant 0 : i32
    return %arg1, %c0_i32, %c0_i32_0 : i32, i32, i32
  }
  func.func @transform_16(%arg0: i32, %arg1: i32) -> (i32, i32, i32) {
    %c0_i32 = arith.constant 0 : i32
    %c0_i32_0 = arith.constant 0 : i32
    %c0_i32_1 = arith.constant 0 : i32
    return %arg1, %c0_i32, %c0_i32_0 : i32, i32, i32
  }
  func.func @transform_17(%arg0: i32, %arg1: i32) -> (i32, i32, i32) {
    %c0_i32 = arith.constant 0 : i32
    %c0_i32_0 = arith.constant 0 : i32
    %c0_i32_1 = arith.constant 0 : i32
    return %arg0, %c0_i32, %c0_i32_0 : i32, i32, i32
  }
}

</mosaic_0001>

<bundles_post_ra>
// kernel: server_model_vit.3
= control target key start
LH: loop header
LB: loop body
LE: loop exit
PB: predicated region body
PF: predicated region fallthrough
CT: control target
= control target key end

     0   :  { %10 = vsyncpa [#allocation3], 0  ;;  %s660_s0 = inlined_call_operand.vmem [shape: f32[2,8,32], index: 0, kind: input, shape index: {}]   ;;  %s661_s1 = inlined_call_operand.vmem [shape: f32[1,32], index: 1, kind: input, shape index: {}]   ;;  %s662_s2 = inlined_call_operand.vmem [shape: f32[1,32], index: 2, kind: input, shape index: {}]   ;;  %s663_s3 = inlined_call_operand.vmem [shape: bf16[32,16], index: 3, kind: input, shape index: {}]   ;;  %s664_s4 = inlined_call_operand.vmem [shape: f32[1,16], index: 4, kind: input, shape index: {}]   ;;  %s665_s5 = inlined_call_operand.hbm [shape: f32[2,1,16], index: 5, kind: output, shape index: {}]  }
   0x1   :  { %12 = vsyncpa [#allocation3 + $0x1], 0  ;;  %s542_s18 = smov 0   ;;  %s544_s19 = smov 0  }
   0x2   :  { %s546_s20 = smov 0   ;;  %s548_s21 = smov 0  }
   0x3 LB: > { %s563_s22 = sadd.s32 4294967295, %s507_s21   ;;  %s380_s23 = sadd.s32 4294967294, %s507_s21   ;;  %s507_s21 = sphi %s548_s21, %s671_s21   ;;  %s503_s20 = sphi %s546_s20, %s670_s20   ;;  %s499_s19 = sphi %s544_s19, %s669_s19   ;;  %s495_s18 = sphi %s542_s18, %s668_s18  }
   0x4   : > { %s567_s24 = sadd.s32 1, %s507_s21   ;;  %s135_s25 = sadd.s32 1, %s503_s20 }
   0x5   : > { %s132_s26 = ssub.s32 %s507_s21, %s567_s24  ;;  %p145_p0 = scmp.ne.s32.totalorder %s503_s20, %s499_s19 }
   0x6   : > { %p133_p1 = scmp.eq.s32.totalorder %s132_s26, 0  ;;  %p146_p2 = scmp.eq.s32.totalorder %s563_s22, 1 }
   0x7   : > { %p151_p3 = scmp.ne.s32.totalorder %s499_s19, %s495_s18  ;;  %p152_p4 = scmp.eq.s32.totalorder %s380_s23, 1 }
   0x8   : > { %s578_s27 = scalar_select %p133_p1, %s503_s20, %s135_s25  }
   0x9   : > { %p580_p5 = por %p146_p2, %p145_p0  ;;  %p584_p6 = por %p152_p4, %p151_p3 }
   0xa   : > { %p383_p7 = scmp.ge.s32.totalorder %s507_s21, 1  ;;  %p189_p8 = scmp.lt.s32.totalorder %s507_s21, 3 }
   0xc   : > { %p190_p9 = pnand %p383_p7, %p189_p8 }
   0xd   : > { %p215_p10 = scmp.lt.s32.totalorder (!%p190_p9), %s563_s22, 1  ;;  %s213_s23 = sand.u32 (!%p190_p9), 1, %s499_s19  }
   0xe   : > { %193 = sbr.rel (%p190_p9) target bundleno = 558 (0x22e), region = 40  ;;  %s313_s11 = scalar_lea.sflag (!%p190_p9), [#allocation3], %s213_s23 }
   0xf   : > { %s511_s12 = smov (!%p190_p9), [#allocation2]  }
  0x10   : > { %s451_s13 = sshll.u32 (!%p190_p9), %s511_s12, 4  ;;  %s452_s13 = int_to_ptr.vmem [resolvable:$false] %s451_s13 }
  0x11   : > { %s453_s14 = scalar_lea.vmem (!%p190_p9), %s452_s13, 32 }
  0x13   : > { %s216_s30 = scalar_select %p215_p10, %s563_s22, 1  ;;  %vm221_vm0 = vcmask 261120   ;;  %v443_v15 = vld [vmem:[%s663_s3 + $0x8] sm:$0xff]   ;;  %v509_v16 = vmov 0.0   ;;  %vm510_vm1 = vmmov 0   ;;  %v444_v17 = vld [vmem:[%s663_s3] sm:$0xff]  }
  0x14   : > { %394 = vmatprep.subr.bf16.mxu0 %v509_v16  ;;  %398 = vmatprep.mubr.msk.bf16.mxu0 %vm510_vm1, %v509_v16  ;;  %v231_v22 = vld [vmem:[%s661_s1] sm:$0x1]  ;;  %vm310_vm2 = vcmask 122880  }
  0x15   : > { %s384_s6 = sshll.u32 %s216_s30, 3  ;;  %395 = vmatpush3.bf16.msra.mxu0 %v443_v15  ;;  %v232_v24 = vld [vmem:[%s662_s2] sm:$0x1]  ;;  %s388_s30 = sshll.u32 %s563_s22, 4 }
  0x16   : > { %s218_s9 = scalar_lea.vmem %s660_s0, %s384_s6  ;;  %396 = vmatprep.subr.bf16.mxu0 %v509_v16  ;;  %v254_v28 = vld [vmem:[%s664_s4] sm:$0x1]  ;;  %s214_s6 = scalar_lea.vmem [#allocation2], %s213_s23 }
  0x17   : > { %v220_v0 = vld [vmem:[%s218_s9] sm:$0xff]  ;;  %s325_s7 = sshll.u32 %s214_s6, 4  ;;  %s619_s10 = scalar_lea.hbm %s665_s5, %s388_s30  ;;  %s621_s7 = int_to_ptr.vmem [resolvable:$true] %s325_s7 }
  0x18   : > { %v222_v1 = vsel %vm221_vm0, %v220_v0, 0.0  ;;  %s447_s22 = scalar_lea.vmem %s621_s7, 16  ;;  %p454_p0 = scmp.lt.s32.totalorder %s621_s7, %s452_s13 }
  0x19   : > { %v223_v2 = vrot.slane %v222_v1, 4  ;;  %397 = vmatpush3.bf16.msra.mxu0 %v444_v17  ;;  %p448_p11 = scmp.ne.s32.totalorder %s621_s7, %s447_s22  ;;  %p455_p1 = scmp.lt.s32.totalorder %s453_s14, %s447_s22 }
  0x1b   : > { %v224_v3 = vadd.f32 %v223_v2, %v222_v1  ;;  %p449_p12 = pnand %p448_p11, %p580_p5  ;;  %p456_p2 = por %p455_p1, %p454_p0 }
  0x1d   : > { %v225_v4 = vrot.slane %v224_v3, 2  ;;  %p450_p13 = pneg %p449_p12 }
  0x1f   : > { %v226_v5 = vadd.f32 %v225_v4, %v224_v3  ;;  %p457_p3 = pnand %p456_p2, %p450_p13 }
  0x21   : > { %v227_v6 = vrot.slane %v226_v5, 1 }
  0x23   : > { %v228_v7 = vadd.f32 %v227_v6, %v226_v5 }
  0x25   : > { %v230_v8 = vmul.f32 0.125, %v228_v7 }
  0x27   : > { %v233_v9 = vsel %vm221_vm0, %v230_v8, 0.0 }
  0x28   : > { %234 = vadd.xlane.f32.xlu0 %v233_v9 }
  0xb1   : > { %v235_v10 = vpop.xlane.xlu0 %234 }
  0xb2   : > { %v237_v11 = vmul.f32 0.03125, %v235_v10 }
  0xb4   : > { %v238_v12 = vsub.f32 %v230_v8, %v237_v11 }
  0xb6   : > { %v239_v13 = vmul.f32 %v238_v12, %v238_v12 }
  0xb8   : > { %v240_v14 = vsel %vm221_vm0, %v239_v13, 0.0 }
  0xb9   : > { %241 = vadd.xlane.f32.xlu0 %v240_v14 }
 0x142   : > { %v242_v18 = vpop.xlane.xlu0 %241 }
 0x143   : > { %v243_v19 = vmul.f32 0.03125, %v242_v18 }
 0x145   : > { %v244_v20 = vadd.f32 1e-05, %v243_v19 }
 0x147   : > { %445 = vrsqrt.f32 %v244_v20 }
 0x154   : > { %v446_v21 = vpop.eup %445 }
 0x155   : > { %v246_v23 = vmul.f32 %v446_v21, %v238_v12 }
 0x157   : > { %v247_v25 = vmul.f32 %v246_v23, %v231_v22 }
 0x159   : > { %v248_v26 = vadd.f32 %v247_v25, %v232_v24 }
 0x15b   : > { %v249_v27 = vpack.c.bf16 %v248_v26, %v248_v26 }
 0x15d   : > { %399 = vmatmul.mubr.msk.bf16.vlgmr.msra.gmra.mxu0 %vm221_vm0, %v249_v27 }
 0x21d   : > { %v304_v29 = vpop.f32.mrf.mxu0 }
 0x21e   : > { %v305_v30 = vadd.f32 %v304_v29, %v254_v28 }
 0x21f   : > { %v400_v31 = vpop.f32.mrf.mxu0 }
 0x220   : > { %311 = vst.msk [vmem:[%s214_s6] sm:$0x1] %vm310_vm2, %v305_v30 }
 0x221   : > { %v307_v32 = vpop.f32.mrf.mxu0 }
 0x222   : > { %460 = shalt.err (!%p457_p3)
}
 0x223   : > { %s461_s15 = scalar_lea.hbm %s619_s10, 16  ;;  %s465_s23 = scalar_lea.hbm %s665_s5, 32 }
 0x224   : > { %p462_p4 = scmp.ne.s32.totalorder %s619_s10, %s461_s15  ;;  %p466_p9 = scmp.lt.s32.totalorder %s619_s10, %s665_s5 }
 0x225   : > { %p467_p10 = scmp.lt.s32.totalorder %s465_s23, %s461_s15 }
 0x226   : > { %p463_p7 = pnand %p462_p4, %p580_p5 }
 0x227   : > { %p468_p11 = por %p467_p10, %p466_p9 }
 0x228   : > { %p464_p8 = pneg %p463_p7 }
 0x22a   : > { %p469_p12 = pnand %p468_p11, %p464_p8 }
 0x22c   : > { %472 = shalt.err (!%p469_p12)
}
 0x22d   : > { %402 = dma.vmem_to_hbm [thread:$0]  (%p580_p5), %s621_s7, 16, %s619_s10, %s313_s11   ;;  %v401_v33 = vpop.f32.mrf.mxu0 }
 0x22e PF: > { %p408_p13 = scmp.ge.s32.totalorder %s507_s21, 2  ;;  %s337_s30 = sand.u32 1, %s495_s18  }
 0x22f   : > { %s338_s6 = scalar_lea.sflag [#allocation3], %s337_s30 }
 0x230   : > { %p405_p0 = pnand %p408_p13, %p584_p6 }
 0x232   : > { %p406_p1 = pneg %p405_p0 }
 0x234   : > { %490 = dma.done.wait (%p406_p1), %s338_s6, 16  }
 0x235   : > { %492 = vsyncadd (%p406_p1), %s338_s6, 4294967280  ;;  %p15_p2 = scmp.ge.s32.totalorder %s567_s24, 4   ;;  %s668_s18 = smov %s499_s19 }
 0x236   : > { %s669_s19 = smov %s503_s20  ;;  %s670_s20 = smov %s578_s27 }
 0x237   : > { %s671_s21 = smov %s567_s24  ;;  %17 = sbr.rel (!%p15_p2) target bundleno = 3 (0x3), region = 75 }
 0x23c   :  { %342 = vsyncpa [#allocation3], 1 }
 0x23d   :  { %344 = vsyncpa [#allocation3 + $0x1], 1 }

// kernel: server_model_vit.2
= control target key start
LH: loop header
LB: loop body
LE: loop exit
PB: predicated region body
PF: predicated region fallthrough
CT: control target
= control target key end

     0   :  { %s2482_s24 = smov 0   ;;  %s2484_s25 = smov 0   ;;  %s2800_s0 = inlined_call_operand.vmem [shape: f32[2,8,32], index: 0, kind: input, shape index: {}, may-alias: {0,17}]   ;;  %s2801_s1 = inlined_call_operand.vmem [shape: f32[2,1,32], index: 1, kind: input, shape index: {}]   ;;  %s2802_s2 = inlined_call_operand.vmem [shape: f32[2,1,32], index: 2, kind: input, shape index: {}]   ;;  %s2803_s3 = inlined_call_operand.vmem [shape: bf16[2,32,32], index: 3, kind: input, shape index: {}]   ;;  %s2804_s4 = inlined_call_operand.vmem [shape: f32[2,1,32], index: 4, kind: input, shape index: {}]   ;;  %s2805_s5 = inlined_call_operand.vmem [shape: bf16[2,32,32], index: 5, kind: input, shape index: {}]   ;;  %s2806_s6 = inlined_call_operand.vmem [shape: f32[2,1,32], index: 6, kind: input, shape index: {}]   ;;  %s2807_s7 = inlined_call_operand.vmem [shape: bf16[2,32,32], index: 7, kind: input, shape index: {}]   ;;  %s2808_s8 = inlined_call_operand.vmem [shape: f32[2,1,32], index: 8, kind: input, shape index: {}]   ;;  %s2809_s9 = inlined_call_operand.vmem [shape: bf16[2,32,32], index: 9, kind: input, shape index: {}]   ;;  %s2810_s10 = inlined_call_operand.vmem [shape: f32[2,1,32], index: 10, kind: input, shape index: {}]   ;;  %s2811_s11 = inlined_call_operand.vmem [shape: f32[2,1,32], index: 11, kind: input, shape index: {}]   ;;  %s2812_s12 = inlined_call_operand.vmem [shape: f32[2,1,32], index: 12, kind: input, shape index: {}]   ;;  %s2813_s13 = inlined_call_operand.vmem [shape: bf16[2,32,128], index: 13, kind: input, shape index: {}]   ;;  %s2814_s14 = inlined_call_operand.vmem [shape: f32[2,1,128], index: 14, kind: input, shape index: {}]   ;;  %s2815_s15 = inlined_call_operand.vmem [shape: bf16[2,128,32], index: 15, kind: input, shape index: {}]   ;;  %s2816_s16 = inlined_call_operand.vmem [shape: f32[2,1,32], index: 16, kind: input, shape index: {}]   ;;  %s2817_s17 = inlined_call_operand.vmem [shape: f32[2,8,32], index: 17, kind: output, shape index: {}, may-alias: {0,17}]  }
   0x1   :  { %2823 = sst [smem:[#allocation9_spill]] %s2800_s0  ;;  %s2486_s26 = smov 0  }
   0x2   :  { %2824 = sst [smem:[#allocation10_spill]] %s2801_s1  ;;  %s2488_s27 = smov 0  }
   0x3   :  { %2825 = sst [smem:[#allocation11_spill]] %s2803_s3  ;;  %s2490_s28 = smov 0  }
   0x4   :  { %2826 = sst [smem:[#allocation12_spill]] %s2805_s5 }
   0x5   :  { %2827 = sst [smem:[#allocation13_spill]] %s2806_s6 }
   0x6   :  { %2828 = sst [smem:[#allocation14_spill]] %s2807_s7 }
   0x7   :  { %2829 = sst [smem:[#allocation15_spill]] %s2809_s9 }
   0x8   :  { %2830 = sst [smem:[#allocation16_spill]] %s2810_s10 }
   0x9   :  { %2831 = sst [smem:[#allocation17_spill]] %s2811_s11 }
   0xa   :  { %2832 = sst [smem:[#allocation18_spill]] %s2814_s14 }
   0xb   :  { %2833 = sst [smem:[#allocation19_spill]] %s2815_s15 }
   0xc   :  { %2834 = sst [smem:[#allocation20_spill]] %s2816_s16 }
   0xd   :  { %2835 = sst [smem:[#allocation21_spill]] %s2817_s17 }
   0xe LB: > { %2836 = sst [smem:[#allocation2_spill]] %s2366_s24  ;;  %s36_s29 = sadd.s32 1, %s2374_s26  ;;  %s2382_s28 = sphi %s2490_s28, %s27_s28   ;;  %s2378_s27 = sphi %s2488_s27, %s2876_s27   ;;  %s2374_s26 = sphi %s2486_s26, %s2875_s26   ;;  %s2370_s25 = sphi %s2484_s25, %s2874_s25   ;;  %s2366_s24 = sphi %s2482_s24, %s2873_s24  }
   0xf   : > { %2837 = sst [smem:[#allocation3_spill]] %s2374_s26  ;;  %s39_s0 = sadd.s32 1, %s2378_s27 }
  0x10   : > { %2838 = sst [smem:[#allocation4_spill]] %s2378_s27  ;;  %p37_p0 = scmp.ge.s32.totalorder %s36_s29, 2 }
  0x11   : > { %2839 = sst [smem:[#allocation5_spill]] %s2382_s28  ;;  %p2043_p1 = scmp.ge.s32.totalorder %s2382_s28, 1 }
  0x12   : > { %p638_p2 = scmp.lt.s32.totalorder %s2382_s28, 5  ;;  %s2878_s29 = smov (%p37_p0, %s36_s29), 0 }
  0x13   : > { %2840 = sst [smem:[#allocation6_spill]] %s2878_s29  ;;  %s2880_s0 = smov (!%p37_p0, %s39_s0), %s2378_s27 }
  0x14   : > { %p639_p3 = pnand %p2043_p1, %p638_p2  ;;  %p41_p4 = scmp.ge.s32.totalorder %s2880_s0, 2 }
  0x16   : > { %s2882_s0 = smov (%p41_p4, %s2880_s0), 0  ;;  %642 = sbr.rel (%p639_p3) target bundleno = 2495 (0x9bf), region = 88 }
  0x17   : > { %2841 = sst [smem:[#allocation7_spill]] %s2882_s0 }
  0x1b   : > { %p748_p5 = scmp.lt.s32.totalorder %s2370_s25, 1  ;;  %p752_p6 = scmp.lt.s32.totalorder %s2366_s24, 1 }
  0x1c   : > { %s2842_s20 = sld [smem:[#allocation9_spill]] }
  0x1d   : > { %s2884_s25 = smov (!%p748_p5, %s2370_s25), 1  ;;  %s2844_s3 = sld [smem:[#allocation11_spill]] }
  0x1e   : > { %s2516_s30 = scalar_select %p752_p6, %s2366_s24, 1 }
  0x1f   : > { %s2044_s18 = sshll.u32 %s2884_s25, 3  ;;  %s2845_s5 = sld [smem:[#allocation12_spill]] }
  0x20   : > { %s2102_s24 = sshll.u32 %s2516_s30, 4  ;;  %s2847_s7 = sld [smem:[#allocation14_spill]] }
  0x21   : > { %s2848_s9 = sld [smem:[#allocation15_spill]]  ;;  %s2577_s17 = scalar_lea.vmem %s2813_s13, %s2102_s24 }
  0x22   : > { %s751_s21 = scalar_lea.vmem %s2842_s20, %s2044_s18  ;;  %s2854_s26 = sld [smem:[#allocation19_spill]] }
  0x23   : > { %s2533_s25 = scalar_lea.vmem %s2844_s3, %s2102_s24  ;;  %s2852_s3 = sld [smem:[#allocation18_spill]] }
  0x25   : > { %s2542_s22 = scalar_lea.vmem %s2845_s5, %s2102_s24  ;;  %s2853_s5 = sld [smem:[#allocation20_spill]] }
  0x26   : > { %s2551_s29 = scalar_lea.vmem %s2847_s7, %s2102_s24  ;;  %s2855_s7 = sld [smem:[#allocation21_spill]] }
  0x27   : > { %s2560_s1 = scalar_lea.vmem %s2848_s9, %s2102_s24  ;;  %s2856_s24 = sld [smem:[#allocation2_spill]] }
  0x28   : > { %2849 = sst [smem:[#allocation8_spill]] %s2560_s1  ;;  %s2107_s1 = sshll.u32 %s2516_s30, 6 }
  0x29   : > { %s803_s9 = scalar_lea.vmem %s2852_s3, %s2516_s30  ;;  %s2591_s11 = scalar_lea.vmem %s2854_s26, %s2107_s1 }
  0x2b   : > { %s811_s10 = scalar_lea.vmem %s2853_s5, %s2516_s30 }
  0x2c   : > { %s2596_s6 = scalar_lea.vmem %s2855_s7, %s2044_s18 }
  0x2d   : > { %p2058_p7 = scmp.ne.s32.totalorder %s2856_s24, 0 }
  0x2f   : > { %820 = sbr.rel (%p2058_p7) target bundleno = 54 (0x36), region = 92 }
  0x34   : > { %v821_v0 = vld [vmem:[%s751_s21] sm:$0xff]  ;;  %vm822_vm0 = vcmask 261120  }
  0x35   : > { %823 = vst.msk [vmem:[%s2596_s6] sm:$0xff] %vm822_vm0, %v821_v0 }
  0x36 PF: > { %vm827_vm1 = vcmask 261120   ;;  %v2304_v8 = vld [vmem:[%s2533_s25 + $0x8] sm:$0xff]   ;;  %v2384_v9 = vmov 0.0   ;;  %vm2385_vm2 = vmmov 0   ;;  %v2305_v10 = vld [vmem:[%s2533_s25] sm:$0xff]   ;;  %s2857_s7 = sld [smem:[#allocation10_spill]]  ;;  %s2859_s1 = scalar_lea.vmem %s2802_s2, %s2516_s30 }
  0x37   : > { %2148 = vmatprep.subr.bf16.mxu0 %v2384_v9  ;;  %2152 = vmatprep.mubr.msk.bf16.mxu0 %vm2385_vm2, %v2384_v9  ;;  %v2060_v17 = vld [vmem:[%s2859_s1] ss:$0 sm:$0xff]  ;;  %v2306_v20 = vld [vmem:[%s2542_s22 + $0x8] sm:$0xff]   ;;  %s2860_s15 = scalar_lea.vmem %s2804_s4, %s2516_s30  ;;  %s2861_s14 = sld [smem:[#allocation13_spill]]  ;;  %vm1091_vm3 = vcmask 64512   ;;  %vm1331_vm4 = vcmask 1043456  }
  0x38   : > { %2149 = vmatpush3.bf16.msra.mxu0 %v2304_v8  ;;  %2172 = vmatprep.subr.bf16.mxu1 %v2384_v9  ;;  %v2307_v22 = vld [vmem:[%s2542_s22] sm:$0xff]   ;;  %v2308_v23 = vld [vmem:[%s2551_s29 + $0x8] sm:$0xff]   ;;  %s2387_s0 = smov 112   ;;  %s2388_s23 = smov 104   ;;  %vm1526_vm5 = vcmask 130048   ;;  %vm1528_vm6 = vcmask 195584  }
  0x39   : > { %2150 = vmatprep.subr.bf16.mxu0 %v2384_v9  ;;  %2174 = vmatprep.mubr.msk.bf16.mxu1 %vm2385_vm2, %v2384_v9  ;;  %v2309_v24 = vld [vmem:[%s2551_s29] sm:$0xff]   ;;  %s2386_s29 = smov 120   ;;  %s2863_s24 = scalar_lea.vmem %s2808_s8, %s2516_s30 }
  0x3a   : > { %v2061_v25 = vld [vmem:[%s2860_s15] ss:$0 sm:$0xff]  ;;  %s2864_s3 = sld [smem:[#allocation8_spill]]  ;;  %s2389_s5 = smov 8  }
  0x3b   : > { %v2069_v47 = vld [vmem:[%s2863_s24] ss:$0 sm:$0xff]  ;;  %s2865_s1 = sld [smem:[#allocation16_spill]] }
  0x3c   : > { %v2601_v1 = vld [vmem:[%s2596_s6] sm:$0xff]  ;;  %2151 = vmatpush3.bf16.msra.mxu0 %v2305_v10  ;;  %s2858_s18 = scalar_lea.vmem %s2857_s7, %s2516_s30  ;;  %s2390_s7 = smov 16  }
  0x3d   : > { %v828_v2 = vsel %vm827_vm1, %v2601_v1, 0.0  ;;  %2156 = vmatprep.subr.bf16.mxu0 %v2384_v9  ;;  %v2059_v15 = vld [vmem:[%s2858_s18] ss:$0 sm:$0xff]  ;;  %s2862_s20 = scalar_lea.vmem %s2861_s14, %s2516_s30  ;;  %s2391_s18 = smov 24  }
  0x3e   : > { %829 = vadd.xlane.f32.xlu0 %v828_v2  ;;  %v2065_v31 = vld [vmem:[%s2862_s20] ss:$0 sm:$0xff]  ;;  %s2867_s15 = sld [smem:[#allocation17_spill]]  ;;  %s2869_s14 = scalar_lea.vmem %s2812_s12, %s2516_s30 }
  0x41   : > { %s2866_s22 = scalar_lea.vmem %s2865_s1, %s2516_s30 }
  0xc7   : > { %v830_v3 = vpop.xlane.xlu0 %829 }
  0xc8   : > { %v832_v4 = vmul.f32 0.03125, %v830_v3 }
  0xca   : > { %v833_v5 = vsub.f32 %v2601_v1, %v832_v4 }
  0xcc   : > { %v834_v6 = vmul.f32 %v833_v5, %v833_v5 }
  0xce   : > { %v835_v7 = vsel %vm827_vm1, %v834_v6, 0.0 }
  0xcf   : > { %836 = vadd.xlane.f32.xlu0 %v835_v7 }
 0x158   : > { %v837_v11 = vpop.xlane.xlu0 %836 }
 0x159   : > { %v838_v12 = vmul.f32 0.03125, %v837_v11 }
 0x15b   : > { %v839_v13 = vadd.f32 1e-05, %v838_v12 }
 0x15d   : > { %2322 = vrsqrt.f32 %v839_v13 }
 0x16a   : > { %v2323_v14 = vpop.eup %2322 }
 0x16b   : > { %v841_v16 = vmul.f32 %v2323_v14, %v833_v5 }
 0x16d   : > { %v848_v18 = vmul.f32 %v2059_v15, %v841_v16 }
 0x16f   : > { %v855_v19 = vadd.f32 %v2060_v17, %v848_v18 }
 0x171   : > { %v856_v21 = vpack.c.bf16 %v855_v19, %v855_v19 }
 0x173   : > { %2153 = vmatmul.mubr.msk.bf16.vlgmr.msra.gmra.mxu0 %vm827_vm1, %v856_v21 }
 0x174   : > { %2157 = vmatpush3.bf16.msra.mxu0 %v2306_v20  ;;  %2160 = vmatprep.mubr.msk.bf16.mxu0 %vm2385_vm2, %v2384_v9 }
 0x175   : > { %2158 = vmatprep.subr.bf16.mxu0 %v2384_v9 }
 0x178   : > { %2159 = vmatpush3.bf16.msra.mxu0 %v2307_v22 }
 0x179   : > { %2164 = vmatprep.subr.bf16.mxu0 %v2384_v9 }
 0x17b   : > { %2161 = vmatmul.mubr.msk.bf16.vlgmr.msra.gmra.mxu0 %vm827_vm1, %v856_v21 }
 0x17c   : > { %2165 = vmatpush3.bf16.msra.mxu0 %v2308_v23  ;;  %2168 = vmatprep.mubr.msk.bf16.mxu0 %vm2385_vm2, %v2384_v9 }
 0x17d   : > { %2166 = vmatprep.subr.bf16.mxu0 %v2384_v9 }
 0x180   : > { %2167 = vmatpush3.bf16.msra.mxu0 %v2309_v24 }
 0x181   : > { %2178 = vmatprep.subr.bf16.mxu0 %v2384_v9 }
 0x183   : > { %2169 = vmatmul.mubr.msk.bf16.vlgmr.msra.gmra.mxu0 %vm827_vm1, %v856_v21 }
 0x184   : > { %2180 = vmatprep.mubr.msk.bf16.mxu0 %vm2385_vm2, %v2384_v9 }
 0x233   : > { %v917_v26 = vpop.f32.mrf.mxu0 }
 0x234   : > { %v918_v27 = vadd.f32 %v2061_v25, %v917_v26 }
 0x235   : > { %v2154_v28 = vpop.f32.mrf.mxu0 }
 0x236   : > { %1050 = vrot.lane.b32.xlu0 %v918_v27, %s2386_s29  ;;  %v1059_v41 = vpack.c.bf16 %v918_v27, %v918_v27 }
 0x237   : > { %v920_v29 = vpop.f32.mrf.mxu0 }
 0x239   : > { %v2155_v30 = vpop.f32.mrf.mxu0 }
 0x23b   : > { %v980_v32 = vpop.f32.mrf.mxu0 }
 0x23c   : > { %v981_v33 = vadd.f32 %v2065_v31, %v980_v32 }
 0x23d   : > { %v2162_v34 = vpop.f32.mrf.mxu0 }
 0x23e   : > { %1064 = vrot.lane.b32.xlu1 %v981_v33, %s2386_s29  ;;  %v1073_v35 = vpack.c.bf16 %v981_v33, %v981_v33 }
 0x23f   : > { %v983_v36 = vpop.f32.mrf.mxu0 }
 0x240   : > { %v1096_v37 = vsel %vm1091_vm3, %v1073_v35, 0 }
 0x241   : > { %v2163_v38 = vpop.f32.mrf.mxu0  ;;  %2173 = vmatpush3.bf16.xpose.msra.mxu1 %v1096_v37 }
 0x242   : > { %1067 = vrot.lane.b32.xlu1 %v981_v33, %s2387_s0  ;;  %2184 = vmatprep.subr.bf16.mxu1 %v2384_v9 }
 0x243   : > { %v1043_v39 = vpop.f32.mrf.mxu0 }
 0x244   : > { %v2672_v51 = vadd.f32 %v2069_v47, %v1043_v39 }
 0x245   : > { %v2170_v40 = vpop.f32.mrf.mxu0 }
 0x246   : > { %1070 = vrot.lane.b32.xlu1 %v981_v33, %s2388_s23  ;;  %v1087_v57 = vpack.c.bf16 %v2672_v51, %v2672_v51 }
 0x247   : > { %v1046_v42 = vpop.f32.mrf.mxu0 }
 0x248   : > { %2175 = vmatmul.mubr.msk.bf16.vlgmr.msra.gmra.mxu1 %vm1091_vm3, %v1059_v41  ;;  %v1333_v60 = vsel %vm1331_vm4, %v1087_v57, 0 }
 0x249   : > { %v2171_v43 = vpop.f32.mrf.mxu0  ;;  %2186 = vmatprep.mubr.msk.bf16.mxu1 %vm2385_vm2, %v2384_v9 }
 0x24a   : > { %1053 = vrot.lane.b32.xlu1 %v918_v27, %s2387_s0 }
 0x24e   : > { %1056 = vrot.lane.b32.xlu1 %v918_v27, %s2388_s23 }
 0x2a8   : > { %v1051_v50 = vpop.permute.xlu0 %1050 }
 0x2a9   : > { %v1060_v54 = vpack.c.bf16 %v1051_v50, %v1051_v50 }
 0x2b0   : > { %v1065_v44 = vpop.permute.xlu1 %1064 }
 0x2b1   : > { %v1074_v45 = vpack.c.bf16 %v1065_v44, %v1065_v44 }
 0x2b3   : > { %v1142_v46 = vsel %vm1091_vm3, %v1074_v45, 0 }
 0x2b4   : > { %2179 = vmatpush3.bf16.xpose.msra.mxu0 %v1142_v46  ;;  %v1068_v48 = vpop.permute.xlu1 %1067 }
 0x2b5   : > { %v1075_v49 = vpack.c.bf16 %v1068_v48, %v1068_v48  ;;  %2190 = vmatprep.subr.bf16.mxu0 %v2384_v9 }
 0x2b7   : > { %v1188_v52 = vsel %vm1091_vm3, %v1075_v49, 0 }
 0x2b8   : > { %v1071_v53 = vpop.permute.xlu1 %1070  ;;  %2185 = vmatpush3.bf16.xpose.msra.mxu1 %v1188_v52 }
 0x2b9   : > { %v1076_v55 = vpack.c.bf16 %v1071_v53, %v1071_v53  ;;  %2196 = vmatprep.subr.bf16.mxu1 %v2384_v9 }
 0x2bb   : > { %v1234_v56 = vsel %vm1091_vm3, %v1076_v55, 0  ;;  %2181 = vmatmul.mubr.msk.bf16.vlgmr.msra.gmra.mxu0 %vm1091_vm3, %v1060_v54 }
 0x2bc   : > { %2191 = vmatpush3.bf16.xpose.msra.mxu0 %v1234_v56  ;;  %v1054_v58 = vpop.permute.xlu1 %1053  ;;  %2192 = vmatprep.mubr.msk.bf16.mxu0 %vm2385_vm2, %v2384_v9 }
 0x2bd   : > { %v1061_v59 = vpack.c.bf16 %v1054_v58, %v1054_v58  ;;  %2202 = vmatprep.subr.bf16.mxu0 %v2384_v9 }
 0x2bf   : > { %2187 = vmatmul.mubr.msk.bf16.vlgmr.msra.gmra.mxu1 %vm1091_vm3, %v1061_v59 }
 0x2c0   : > { %v1057_v61 = vpop.permute.xlu1 %1056  ;;  %2197 = vmatpush3.bf16.msra.mxu1 %v1333_v60  ;;  %2198 = vmatprep.mubr.msk.bf16.mxu1 %vm2385_vm2, %v2384_v9 }
 0x2c1   : > { %v1062_v62 = vpack.c.bf16 %v1057_v61, %v1057_v61  ;;  %2208 = vmatprep.subr.bf16.mxu1 %v2384_v9 }
 0x2c3   : > { %2193 = vmatmul.mubr.msk.bf16.vlgmr.msra.gmra.mxu0 %vm1091_vm3, %v1062_v62 }
 0x2c4   : > { %2204 = vmatprep.mubr.msk.bf16.mxu0 %vm2385_vm2, %v2384_v9 }
 0x308   : > { %v1132_v63 = vpop.f32.mrf.mxu1 }
 0x309   : > { %v1276_v0 = vsel %vm1091_vm3, %v1132_v63, -inf }
 0x30a   : > { %1277 = vmax.xlane.f32.xlu1 %v1276_v0  ;;  %v2176_v2 = vpop.f32.mrf.mxu1 }
 0x30c   : > { %v1135_v3 = vpop.f32.mrf.mxu1 }
 0x30e   : > { %v2177_v4 = vpop.f32.mrf.mxu1 }
 0x37b   : > { %v1178_v5 = vpop.f32.mrf.mxu0 }
 0x37c   : > { %v1279_v6 = vsel %vm1091_vm3, %v1178_v5, -inf }
 0x37d   : > { %1280 = vmax.xlane.f32.xlu0 %v1279_v6  ;;  %v2182_v7 = vpop.f32.mrf.mxu0 }
 0x37f   : > { %v1181_v8 = vpop.f32.mrf.mxu0  ;;  %v1224_v10 = vpop.f32.mrf.mxu1 }
 0x380   : > { %v1282_v11 = vsel %vm1091_vm3, %v1224_v10, -inf }
 0x381   : > { %1283 = vmax.xlane.f32.xlu1 %v1282_v11  ;;  %v2183_v12 = vpop.f32.mrf.mxu0  ;;  %v2188_v13 = vpop.f32.mrf.mxu1 }
 0x382   : > { %v2310_v12 = vld [vmem:[%s2864_s3 + $0x8] sm:$0xff]  }
 0x383   : > { %v1227_v14 = vpop.f32.mrf.mxu1  ;;  %v1270_v15 = vpop.f32.mrf.mxu0 }
 0x384   : > { %v1285_v16 = vsel %vm1091_vm3, %v1270_v15, -inf }
 0x385   : > { %v2189_v17 = vpop.f32.mrf.mxu1  ;;  %1286 = vmax.xlane.f32.xlu1 %v1285_v16  ;;  %v2194_v18 = vpop.f32.mrf.mxu0 }
 0x387   : > { %v1273_v19 = vpop.f32.mrf.mxu0 }
 0x389   : > { %v2195_v20 = vpop.f32.mrf.mxu0 }
 0x393   : > { %v1278_v21 = vpop.xlane.xlu1 %1277 }
 0x394   : > { %v1288_v22 = vsub.f32 %v1132_v63, %v1278_v21  ;;  %v2311_v21 = vld [vmem:[%s2864_s3] sm:$0xff]  }
 0x396   : > { %v1292_v23 = vmul.f32 1.442695, %v1288_v22 }
 0x398   : > { %2324 = vpow2.f32 %v1292_v23 }
 0x3a5   : > { %v2325_v24 = vpop.eup %2324 }
 0x3a6   : > { %v1300_v25 = vsel %vm1091_vm3, %v2325_v24, 0.0 }
 0x3a7   : > { %1301 = vadd.xlane.f32.xlu0 %v1300_v25 }
 0x406   : > { %v1281_v26 = vpop.xlane.xlu0 %1280 }
 0x407   : > { %v1289_v27 = vsub.f32 %v1178_v5, %v1281_v26 }
 0x409   : > { %v1294_v28 = vmul.f32 1.442695, %v1289_v27 }
 0x40a   : > { %v1284_v29 = vpop.xlane.xlu1 %1283 }
 0x40b   : > { %2326 = vpow2.f32 %v1294_v28  ;;  %v1290_v30 = vsub.f32 %v1224_v10, %v1284_v29 }
 0x40d   : > { %v1296_v31 = vmul.f32 1.442695, %v1290_v30 }
 0x40e   : > { %v1287_v37 = vpop.xlane.xlu1 %1286 }
 0x40f   : > { %2328 = vpow2.f32 %v1296_v31  ;;  %v1291_v38 = vsub.f32 %v1270_v15, %v1287_v37 }
 0x411   : > { %v1298_v39 = vmul.f32 1.442695, %v1291_v38 }
 0x418   : > { %v2327_v32 = vpop.eup %2326 }
 0x419   : > { %v1303_v33 = vsel %vm1091_vm3, %v2327_v32, 0.0 }
 0x41a   : > { %1304 = vadd.xlane.f32.xlu1 %v1303_v33  ;;  %v2081_v33 = vld [vmem:[%s2866_s22] ss:$0 sm:$0xff] }
 0x41c   : > { %v2329_v34 = vpop.eup %2328 }
 0x41d   : > { %v1306_v35 = vsel %vm1091_vm3, %v2329_v34, 0.0 }
 0x41e   : > { %1307 = vadd.xlane.f32.xlu0 %v1306_v35 }
 0x42b   : > { %1081 = vrot.lane.b32.xlu1 %v2672_v51, %s2387_s0 }
 0x430   : > { %v1302_v36 = vpop.xlane.xlu0 %1301 }
 0x431   : > { %2330 = vrcp.f32 %v1302_v36 }
 0x432   : > { %2332 = vpow2.f32 %v1298_v39 }
 0x434   : > { %1078 = vrot.lane.b32.xlu0 %v2672_v51, %s2386_s29  ;;  %s2868_s29 = scalar_lea.vmem %s2867_s15, %s2516_s30 }
 0x43e   : > { %v2331_v40 = vpop.eup %2330 }
 0x43f   : > { %v1316_v41 = vmul.f32 0.17677669, %v2331_v40  ;;  %v2333_v44 = vpop.eup %2332 }
 0x440   : > { %v1309_v45 = vsel %vm1091_vm3, %v2333_v44, 0.0 }
 0x441   : > { %v1320_v42 = vmul.f32 %v2325_v24, %v1316_v41 }
 0x443   : > { %v1324_v43 = vpack.c.bf16 %v1320_v42, %v1320_v42 }
 0x445   : > { %2199 = vmatmul.mubr.msk.bf16.vlgmr.msra.gmra.mxu1 %vm1091_vm3, %v1324_v43 }
 0x446   : > { %2210 = vmatprep.mubr.msk.bf16.mxu1 %vm2385_vm2, %v2384_v9 }
 0x44f   : > { %1310 = vadd.xlane.f32.xlu1 %v1309_v45 }
 0x460   : > { %1084 = vrot.lane.b32.xlu1 %v2672_v51, %s2388_s23 }
 0x4a3   : > { %v1305_v46 = vpop.xlane.xlu1 %1304 }
 0x4a4   : > { %2334 = vrcp.f32 %v1305_v46  ;;  %v2312_v46 = vld [vmem:[%s2577_s17 + $0x8] sm:$0xff]  }
 0x4a7   : > { %v1308_v47 = vpop.xlane.xlu0 %1307  ;;  %v1082_v48 = vpop.permute.xlu1 %1081 }
 0x4a8   : > { %2336 = vrcp.f32 %v1308_v47  ;;  %v1089_v49 = vpack.c.bf16 %v1082_v48, %v1082_v48  ;;  %v2314_v47 = vld [vmem:[%s2591_s11 + $0x38] sm:$0xff]   ;;  %v2315_v48 = vld [vmem:[%s2591_s11 + $0x30] sm:$0xff]  }
 0x4aa   : > { %v1425_v50 = vsel %vm1331_vm4, %v1089_v49, 0 }
 0x4ab   : > { %v1079_v52 = vpop.permute.xlu0 %1078  ;;  %2209 = vmatpush3.bf16.msra.mxu1 %v1425_v50 }
 0x4ac   : > { %v1088_v53 = vpack.c.bf16 %v1079_v52, %v1079_v52  ;;  %2220 = vmatprep.subr.bf16.mxu1 %v2384_v9 }
 0x4ae   : > { %v1379_v54 = vsel %vm1331_vm4, %v1088_v53, 0 }
 0x4af   : > { %2203 = vmatpush3.bf16.msra.mxu0 %v1379_v54  ;;  %v2085_v54 = vld [vmem:[%s2868_s29] ss:$0 sm:$0xff] }
 0x4b0   : > { %2214 = vmatprep.subr.bf16.mxu0 %v2384_v9 }
 0x4b1   : > { %v2335_v55 = vpop.eup %2334 }
 0x4b2   : > { %v1317_v51 = vmul.f32 0.17677669, %v2335_v55 }
 0x4b4   : > { %v1321_v56 = vmul.f32 %v2327_v32, %v1317_v51  ;;  %v2086_v51 = vld [vmem:[%s2869_s14] ss:$0 sm:$0xff] }
 0x4b5   : > { %v2337_v57 = vpop.eup %2336 }
 0x4b6   : > { %v1325_v58 = vpack.c.bf16 %v1321_v56, %v1321_v56  ;;  %v1318_v59 = vmul.f32 0.17677669, %v2337_v57 }
 0x4b8   : > { %v1322_v60 = vmul.f32 %v2329_v34, %v1318_v59  ;;  %2205 = vmatmul.mubr.msk.bf16.vlgmr.msra.gmra.mxu0 %vm1091_vm3, %v1325_v58  ;;  %v2316_v59 = vld [vmem:[%s2591_s11 + $0x28] sm:$0xff]  }
 0x4b9   : > { %2216 = vmatprep.mubr.msk.bf16.mxu0 %vm2385_vm2, %v2384_v9 }
 0x4ba   : > { %v1326_v61 = vpack.c.bf16 %v1322_v60, %v1322_v60  ;;  %v2317_v60 = vld [vmem:[%s2591_s11 + $0x20] sm:$0xff]  }
 0x4bc   : > { %2211 = vmatmul.mubr.msk.bf16.vlgmr.msra.gmra.mxu1 %vm1091_vm3, %v1326_v61  ;;  %v2318_v61 = vld [vmem:[%s2591_s11 + $0x18] sm:$0xff]  }
 0x4bd   : > { %2224 = vmatprep.mubr.msk.bf16.mxu1 %vm2385_vm2, %v2384_v9  ;;  %2221 = vmatpush3.bf16.msra.mxu1 %v2310_v12 }
 0x4be   : > { %2222 = vmatprep.subr.bf16.mxu1 %v2384_v9 }
 0x4c1   : > { %2223 = vmatpush3.bf16.msra.mxu1 %v2311_v21 }
 0x4c2   : > { %2236 = vmatprep.subr.bf16.mxu1 %v2384_v9 }
 0x4d8   : > { %v1311_v62 = vpop.xlane.xlu1 %1310 }
 0x4d9   : > { %2338 = vrcp.f32 %v1311_v62  ;;  %v2319_v62 = vld [vmem:[%s2591_s11 + $0x10] sm:$0xff]  }
 0x4dc   : > { %v1085_v63 = vpop.permute.xlu1 %1084 }
 0x4dd   : > { %v1090_v0 = vpack.c.bf16 %v1085_v63, %v1085_v63  ;;  %v2320_v63 = vld [vmem:[%s2591_s11 + $0x8] sm:$0xff]  }
 0x4df   : > { %v1471_v2 = vsel %vm1331_vm4, %v1090_v0, 0  ;;  %v2321_v0 = vld [vmem:[%s2591_s11] sm:$0xff]  }
 0x4e0   : > { %2215 = vmatpush3.bf16.msra.mxu0 %v1471_v2  ;;  %v2087_v2 = vld [vmem:[%s803_s9] ss:$0 sm:$0xff] }
 0x4e1   : > { %2228 = vmatprep.subr.bf16.mxu0 %v2384_v9 }
 0x4e6   : > { %v2339_v3 = vpop.eup %2338 }
 0x4e7   : > { %v1319_v4 = vmul.f32 0.17677669, %v2339_v3 }
 0x4e9   : > { %v1323_v5 = vmul.f32 %v2333_v44, %v1319_v4 }
 0x4eb   : > { %v1327_v6 = vpack.c.bf16 %v1323_v5, %v1323_v5 }
 0x4ed   : > { %2217 = vmatmul.mubr.msk.bf16.vlgmr.msra.gmra.mxu0 %vm1091_vm3, %v1327_v6 }
 0x4ee   : > { %2232 = vmatprep.mubr.msk.bf16.mxu0 %vm2385_vm2, %v2384_v9  ;;  %2229 = vmatpush3.bf16.msra.mxu0 %v2312_v46 }
 0x4ef   : > { %2230 = vmatprep.subr.bf16.mxu0 %v2384_v9 }
 0x505   : > { %v1369_v7 = vpop.f32.mrf.mxu1 }
 0x507   : > { %v2200_v8 = vpop.f32.mrf.mxu1 }
 0x509   : > { %v1372_v10 = vpop.f32.mrf.mxu1 }
 0x50b   : > { %v2201_v11 = vpop.f32.mrf.mxu1 }
 0x578   : > { %v1415_v13 = vpop.f32.mrf.mxu0 }
 0x579   : > { %1514 = vrot.lane.b32.xlu0 %v1415_v13, %s2389_s5 }
 0x57a   : > { %v2206_v14 = vpop.f32.mrf.mxu0 }
 0x57b   : > { %v2091_v14 = vld [vmem:[%s811_s10] ss:$0 sm:$0xff] }
 0x57c   : > { %v1418_v15 = vpop.f32.mrf.mxu0  ;;  %v1461_v16 = vpop.f32.mrf.mxu1 }
 0x57d   : > { %1518 = vrot.lane.b32.xlu1 %v1461_v16, %s2390_s7 }
 0x57e   : > { %v2207_v17 = vpop.f32.mrf.mxu0  ;;  %v2212_v18 = vpop.f32.mrf.mxu1 }
 0x580   : > { %v1464_v19 = vpop.f32.mrf.mxu1 }
 0x582   : > { %v2213_v20 = vpop.f32.mrf.mxu1 }
 0x5ad   : > { %v1507_v22 = vpop.f32.mrf.mxu0 }
 0x5ae   : > { %1522 = vrot.lane.b32.xlu0 %v1507_v22, %s2391_s18 }
 0x5af   : > { %v2218_v23 = vpop.f32.mrf.mxu0 }
 0x5b1   : > { %v1510_v24 = vpop.f32.mrf.mxu0 }
 0x5b3   : > { %v2219_v25 = vpop.f32.mrf.mxu0 }
 0x5eb   : > { %v1515_v26 = vpop.permute.xlu0 %1514 }
 0x5ec   : > { %v1525_v28 = vsel %vm1091_vm3, %v1369_v7, %v1515_v26 }
 0x5ef   : > { %v1519_v27 = vpop.permute.xlu1 %1518 }
 0x5f0   : > { %v1527_v29 = vsel %vm1526_vm5, %v1525_v28, %v1519_v27 }
 0x620   : > { %v1523_v30 = vpop.permute.xlu0 %1522 }
 0x621   : > { %v1529_v31 = vsel %vm1528_vm6, %v1527_v29, %v1523_v30 }
 0x622   : > { %v1530_v32 = vpack.c.bf16 %v1529_v31, %v1529_v31 }
 0x624   : > { %2225 = vmatmul.mubr.msk.bf16.vlgmr.msra.gmra.mxu1 %vm827_vm1, %v1530_v32 }
 0x625   : > { %2252 = vmatprep.mubr.msk.bf16.mxu1 %vm2385_vm2, %v2384_v9  ;;  %2237 = vmatpush3.bf16.msra.mxu1 %v2314_v47 }
 0x626   : > { %2238 = vmatprep.subr.bf16.mxu1 %v2384_v9 }
 0x629   : > { %2239 = vmatpush3.bf16.msra.mxu1 %v2315_v48 }
 0x62a   : > { %2240 = vmatprep.subr.bf16.mxu1 %v2384_v9 }
 0x62d   : > { %2241 = vmatpush3.bf16.msra.mxu1 %v2316_v59 }
 0x62e   : > { %2242 = vmatprep.subr.bf16.mxu1 %v2384_v9 }
 0x631   : > { %2243 = vmatpush3.bf16.msra.mxu1 %v2317_v60 }
 0x632   : > { %2244 = vmatprep.subr.bf16.mxu1 %v2384_v9 }
 0x635   : > { %2245 = vmatpush3.bf16.msra.mxu1 %v2318_v61 }
 0x636   : > { %2246 = vmatprep.subr.bf16.mxu1 %v2384_v9 }
 0x639   : > { %2247 = vmatpush3.bf16.msra.mxu1 %v2319_v62 }
 0x63a   : > { %2248 = vmatprep.subr.bf16.mxu1 %v2384_v9 }
 0x63d   : > { %2249 = vmatpush3.bf16.msra.mxu1 %v2320_v63 }
 0x63e   : > { %2250 = vmatprep.subr.bf16.mxu1 %v2384_v9 }
 0x641   : > { %2251 = vmatpush3.bf16.msra.mxu1 %v2321_v0 }
 0x6e4   : > { %v1591_v34 = vpop.f32.mrf.mxu1 }
 0x6e5   : > { %v1592_v35 = vadd.f32 %v2081_v33, %v1591_v34 }
 0x6e6   : > { %v2226_v36 = vpop.f32.mrf.mxu1 }
 0x6e7   : > { %v2737_v37 = vadd.f32 %v1592_v35, %v2601_v1  ;;  %v2313_v1 = vld [vmem:[%s2577_s17] sm:$0xff]  }
 0x6e8   : > { %v1594_v38 = vpop.f32.mrf.mxu1  ;;  %2231 = vmatpush3.bf16.msra.mxu0 %v2313_v1 }
 0x6e9   : > { %v1600_v39 = vsel %vm827_vm1, %v2737_v37, 0.0 }
 0x6ea   : > { %1601 = vadd.xlane.f32.xlu1 %v1600_v39  ;;  %v2227_v40 = vpop.f32.mrf.mxu1 }
 0x773   : > { %v1602_v41 = vpop.xlane.xlu1 %1601 }
 0x774   : > { %v1603_v42 = vmul.f32 0.03125, %v1602_v41 }
 0x776   : > { %v1604_v43 = vsub.f32 %v2737_v37, %v1603_v42 }
 0x778   : > { %v1605_v44 = vmul.f32 %v1604_v43, %v1604_v43 }
 0x77a   : > { %v1606_v45 = vsel %vm827_vm1, %v1605_v44, 0.0 }
 0x77b   : > { %1607 = vadd.xlane.f32.xlu0 %v1606_v45 }
 0x804   : > { %v1608_v49 = vpop.xlane.xlu0 %1607 }
 0x805   : > { %v1609_v50 = vmul.f32 0.03125, %v1608_v49 }
 0x807   : > { %v1610_v52 = vadd.f32 1e-05, %v1609_v50 }
 0x809   : > { %2340 = vrsqrt.f32 %v1610_v52 }
 0x816   : > { %v2341_v53 = vpop.eup %2340 }
 0x817   : > { %v1612_v55 = vmul.f32 %v2341_v53, %v1604_v43 }
 0x819   : > { %v1619_v56 = vmul.f32 %v2085_v54, %v1612_v55 }
 0x81b   : > { %v1626_v57 = vadd.f32 %v2086_v51, %v1619_v56 }
 0x81d   : > { %v1627_v58 = vpack.c.bf16 %v1626_v57, %v1626_v57 }
 0x81f   : > { %2233 = vmatmul.mubr.msk.bf16.vlgmr.msra.gmra.mxu0 %vm827_vm1, %v1627_v58 }
 0x8df   : > { %v1688_v3 = vpop.f32.mrf.mxu0 }
 0x8e0   : > { %v1689_v4 = vadd.f32 %v2087_v2, %v1688_v3 }
 0x8e1   : > { %v2234_v5 = vpop.f32.mrf.mxu0 }
 0x8e2   : > { %v1695_v6 = vmul.f32 0.70710677, %v1689_v4  ;;  %v1694_v11 = vmul.f32 0.5, %v1689_v4 }
 0x8e3   : > { %v1691_v7 = vpop.f32.mrf.mxu0 }
 0x8e4   : > { %2342 = verf.f32 %v1695_v6 }
 0x8e5   : > { %v2235_v8 = vpop.f32.mrf.mxu0 }
 0x8f1   : > { %v2343_v10 = vpop.eup %2342 }
 0x8f2   : > { %v1697_v12 = vadd.f32 1.0, %v2343_v10 }
 0x8f4   : > { %v1698_v9 = vmul.f32 %v1697_v12, %v1694_v11 }
 0x8f6   : > { %v1699_v13 = vpack.c.bf16 %v1698_v9, %v1698_v9 }
 0x8f8   : > { %2253 = vmatmul.mubr.bf16.vlgmr.msra.gmra.mxu1 %v1699_v13 }
 0x9b8   : > { %v1805_v15 = vpop.f32.mrf.mxu1 }
 0x9b9   : > { %v1806_v16 = vadd.f32 %v2091_v14, %v1805_v15 }
 0x9ba   : > { %v2254_v17 = vpop.f32.mrf.mxu1 }
 0x9bb   : > { %v1811_v18 = vadd.f32 %v1806_v16, %v2737_v37 }
 0x9bc   : > { %v1808_v19 = vpop.f32.mrf.mxu1 }
 0x9bd   : > { %1812 = vst.msk [vmem:[%s2596_s6] sm:$0xff] %vm827_vm1, %v1811_v18 }
 0x9be   : > { %v2255_v20 = vpop.f32.mrf.mxu1 }
 0x9bf PF: > { %s2872_s9 = sld [smem:[#allocation5_spill]] }
 0x9c0   : > { %s2873_s24 = sld [smem:[#allocation3_spill]] }
 0x9c1   : > { %s2874_s25 = sld [smem:[#allocation4_spill]] }
 0x9c2   : > { %s2875_s26 = sld [smem:[#allocation6_spill]] }
 0x9c3   : > { %s2876_s27 = sld [smem:[#allocation7_spill]] }
 0x9c5   : > { %s27_s28 = sadd.s32 1, %s2872_s9  }
 0x9c6   : > { %p24_p8 = scmp.ge.s32.totalorder %s27_s28, 6  }
 0x9c8   :  { %26 = sbr.rel (!%p24_p8) target bundleno = 14 (0xe), region = 170 }

</bundles_post_ra>
